<compile_context>
chip_gen: v5e
topology: v5e:2x2
jax: 0.10.0
libtpu: 0.0.40
codegen_flags: <defaults>
</compile_context>

<pallas_src>
import jax
import jax.numpy as jnp
from jax.experimental import pallas as pl
from jax.experimental.pallas import tpu as pltpu

_LANE = 128
_TM_CAP = 1024        # spatial-tile cap; safe on v5e/v6e/v7x VMEM budgets
_SMALL_M_MAX = 1024   # small-spatial path: max folded N*H*W handled as one block


def _conv1x1_kernel(x_ref, w_ref, b_ref, o_ref):
    # x_ref: (Cin, tm)  w_ref: (Cout, Cin)  b_ref: (Cout, 1)  o_ref: (Cout, tm)
    acc = jnp.dot(w_ref[...], x_ref[...], preferred_element_type=jnp.float32)
    o_ref[...] = (acc + b_ref[...]).astype(o_ref.dtype)


def conv1x1(x_nchw, weight, bias):
    """1x1 conv, stride 1, no padding, NCHW in / NCHW out.

    x_nchw : (N, Cin, H, W) float32
    weight : (Cout, Cin, 1, 1) float32   (PyTorch Conv2d layout)
    bias   : (Cout,) float32
    returns: (N, Cout, H, W) float32
    """
    N, Cin, H, W = x_nchw.shape
    Cout = weight.shape[0]
    HW = H * W

    w_mat = weight.reshape(Cout, Cin)     # (Cout, Cin)
    b_mat = bias.reshape(Cout, 1)         # (Cout, 1)

    # ---- Small-spatial path: fold batch into lanes, one dense matmul ------------
    if HW < _LANE and N * HW <= _SMALL_M_MAX:
        M = N * HW
        # Transpose is on the tiny input side only: (N, Cin, HW) -> (Cin, N*HW).
        x_cm = x_nchw.reshape(N, Cin, HW).transpose(1, 0, 2).reshape(Cin, M)
        out_cm = pl.pallas_call(
            _conv1x1_kernel,
            out_shape=jax.ShapeDtypeStruct((Cout, M), x_nchw.dtype),
            grid_spec=pltpu.PrefetchScalarGridSpec(
                num_scalar_prefetch=0,
                grid=(1,),
                in_specs=[
                    pl.BlockSpec((Cin, M), lambda i: (0, 0)),
                    pl.BlockSpec((Cout, Cin), lambda i: (0, 0)),
                    pl.BlockSpec((Cout, 1), lambda i: (0, 0)),
                ],
                out_specs=pl.BlockSpec((Cout, M), lambda i: (0, 0)),
            ),
        )(x_cm, w_mat, b_mat)
        return (out_cm.reshape(Cout, N, HW).transpose(1, 0, 2)
                      .reshape(N, Cout, H, W))

    # ---- General path: NCHW-native, tiled over (batch, spatial) -----------------
    x_flat = x_nchw.reshape(N, Cin, HW)   # pure reshape, no transpose

    if HW >= _LANE:
        # Largest multiple of 128 that fits in HW, capped at _TM_CAP.  The final
        # grid step may be a partial (masked) block; all other stores stay
        # lane-dense and the output tensor is emitted at its true size (no pad,
        # no post-kernel slice / extra HBM round trip).
        tm = min(_TM_CAP, (HW // _LANE) * _LANE)
    else:
        tm = HW                            # full-extent block (rare fallback)
    nblk = pl.cdiv(HW, tm)

    out_flat = pl.pallas_call(
        _conv1x1_kernel,
        out_shape=jax.ShapeDtypeStruct((N, Cout, HW), x_nchw.dtype),
        grid_spec=pltpu.PrefetchScalarGridSpec(
            num_scalar_prefetch=0,
            grid=(N, nblk),
            in_specs=[
                # x tile: (Cin, tm), new block per (n, j)
                pl.BlockSpec((None, Cin, tm), lambda n, j: (n, 0, j)),
                # W: resident in VMEM for the whole grid
                pl.BlockSpec((Cout, Cin), lambda n, j: (0, 0)),
                # bias: resident in VMEM
                pl.BlockSpec((Cout, 1), lambda n, j: (0, 0)),
            ],
            out_specs=pl.BlockSpec((None, Cout, tm), lambda n, j: (n, 0, j)),
        ),
        compiler_params=pltpu.CompilerParams(
            dimension_semantics=("parallel", "parallel"),
        ),
    )(x_flat, w_mat, b_mat)

    return out_flat.reshape(N, Cout, H, W)


def init_params(key, cin=58, cout=1392):
    # Deterministic init mimicking PyTorch Conv2d default (uniform +/- 1/sqrt(fan_in)).
    kw, kb = jax.random.split(key)
    bound = 1.0 / (cin ** 0.5)
    weight = jax.random.uniform(kw, (cout, cin, 1, 1), jnp.float32, -bound, bound)
    bias = jax.random.uniform(kb, (cout,), jnp.float32, -bound, bound)
    return weight, bias


def _reference(x, weight, bias):
    cout, cin = weight.shape[0], weight.shape[1]
    return (
        jnp.einsum(
            "nchw,oc->nohw",
            x,
            weight.reshape(cout, cin),
            precision=jax.lax.Precision.HIGHEST,
        )
        + bias.reshape(1, -1, 1, 1)
    )


if __name__ == "__main__":
    key = jax.random.PRNGKey(0)
    kx1, kx2, kx3, kp = jax.random.split(key, 4)

    weight, bias = init_params(kp)

    # 1) Literal module shape: x347 of shape (1, 58, 1, 1)  (small-spatial path).
    x_small = jax.random.normal(kx1, (1, 58, 1, 1), dtype=jnp.float32)
    out_small = jax.block_until_ready(conv1x1(x_small, weight, bias))
    ref_small = _reference(x_small, weight, bias)
    assert out_small.shape == (1, 1392, 1, 1), out_small.shape
    assert jnp.allclose(out_small, ref_small, atol=1e-4, rtol=1e-4)

    # 2) Larger spatial/batch shape (tiled path, lane-aligned, no masked block).
    x_big = jax.random.normal(kx2, (2, 58, 16, 16), dtype=jnp.float32)
    out_big = jax.block_until_ready(conv1x1(x_big, weight, bias))
    ref_big = _reference(x_big, weight, bias)
    assert out_big.shape == (2, 1392, 16, 16), out_big.shape
    assert jnp.allclose(out_big, ref_big, atol=1e-4, rtol=1e-4)

    # 3) Non-multiple-of-128 spatial (tiled path with a partial/masked final block).
    x_rag = jax.random.normal(kx3, (1, 58, 12, 12), dtype=jnp.float32)
    out_rag = jax.block_until_ready(conv1x1(x_rag, weight, bias))
    ref_rag = _reference(x_rag, weight, bias)
    assert out_rag.shape == (1, 1392, 12, 12), out_rag.shape
    assert jnp.allclose(out_rag, ref_rag, atol=1e-4, rtol=1e-4)

    print("KERNEL_OK")
</pallas_src>

<mosaic_0001>
module attributes {stable_mosaic.version = 11 : i64} {
  func.func @_conv1x1_kernel(%arg0: i32, %arg1: memref<58x1xf32, #tpu.memory_space<vmem>>, %arg2: memref<1392x58xf32, #tpu.memory_space<vmem>>, %arg3: memref<1392x1xf32, #tpu.memory_space<vmem>>, %arg4: memref<1392x1xf32, #tpu.memory_space<vmem>>) attributes {dimension_semantics = [#tpu.dimension_semantics<arbitrary>], iteration_bounds = array<i64: 1>, scalar_prefetch = 0 : i64, scratch_operands = 0 : i64, tpu.core_type = #tpu.core_type<tc>, window_params = [{pipeline_mode = #tpu.pipeline_mode<synchronous>, transform_indices = @transform_0, window_bounds = array<i64: 58, 1>}, {pipeline_mode = #tpu.pipeline_mode<synchronous>, transform_indices = @transform_1, window_bounds = array<i64: 1392, 58>}, {pipeline_mode = #tpu.pipeline_mode<synchronous>, transform_indices = @transform_2, window_bounds = array<i64: 1392, 1>}, {pipeline_mode = #tpu.pipeline_mode<synchronous>, transform_indices = @transform_3, window_bounds = array<i64: 1392, 1>}]} {
    %c0 = arith.constant 0 : index
    %c0_0 = arith.constant 0 : index
    %0 = vector.load %arg2[%c0, %c0_0] : memref<1392x58xf32, #tpu.memory_space<vmem>>, vector<1392x58xf32>
    %c0_1 = arith.constant 0 : index
    %c0_2 = arith.constant 0 : index
    %1 = vector.load %arg1[%c0_1, %c0_2] : memref<58x1xf32, #tpu.memory_space<vmem>>, vector<58x1xf32>
    %cst = arith.constant dense<0.000000e+00> : vector<1392x1xf32>
    %2 = tpu.matmul %0, %1, %cst {dimension_numbers = #tpu.dot_dimension_numbers<[1], [0], [0], [1], [0, 0, 1, 1], [], []>} : vector<1392x58xf32>, vector<58x1xf32>, vector<1392x1xf32> -> vector<1392x1xf32>
    %c0_3 = arith.constant 0 : index
    %c0_4 = arith.constant 0 : index
    %3 = vector.load %arg3[%c0_3, %c0_4] : memref<1392x1xf32, #tpu.memory_space<vmem>>, vector<1392x1xf32>
    %4 = arith.addf %2, %3 : vector<1392x1xf32>
    %c0_5 = arith.constant 0 : index
    %c0_6 = arith.constant 0 : index
    %5 = vector.load %arg4[%c0_5, %c0_6] : memref<1392x1xf32, #tpu.memory_space<vmem>>, vector<1392x1xf32>
    tpu.vector_store %arg4[%c0_5, %c0_6], %4 {strides = array<i32>} : memref<1392x1xf32, #tpu.memory_space<vmem>>, vector<1392x1xf32>,
    return
  }
  func.func @transform_0(%arg0: i32) -> (i32, i32) {
    %c0_i32 = arith.constant 0 : i32
    %c0_i32_0 = arith.constant 0 : i32
    %c0_i32_1 = arith.constant 0 : i32
    return %c0_i32, %c0_i32_0 : i32, i32
  }
  func.func @transform_1(%arg0: i32) -> (i32, i32) {
    %c0_i32 = arith.constant 0 : i32
    %c0_i32_0 = arith.constant 0 : i32
    %c0_i32_1 = arith.constant 0 : i32
    return %c0_i32, %c0_i32_0 : i32, i32
  }
  func.func @transform_2(%arg0: i32) -> (i32, i32) {
    %c0_i32 = arith.constant 0 : i32
    %c0_i32_0 = arith.constant 0 : i32
    %c0_i32_1 = arith.constant 0 : i32
    return %c0_i32, %c0_i32_0 : i32, i32
  }
  func.func @transform_3(%arg0: i32) -> (i32, i32) {
    %c0_i32 = arith.constant 0 : i32
    %c0_i32_0 = arith.constant 0 : i32
    %c0_i32_1 = arith.constant 0 : i32
    return %c0_i32, %c0_i32_0 : i32, i32
  }
}

</mosaic_0001>

<bundles_post_ra>
// kernel: tpu_custom_call.1
= control target key start
LH: loop header
LB: loop body
LE: loop exit
PB: predicated region body
PF: predicated region fallthrough
CT: control target
= control target key end

     0   :  { %vm893_vm0 = vcmask 1041408   ;;  %vm370_vm1 = vcmask 474112   ;;  %vm1436_vm2 = vcmask 7168   ;;  %s3772_s0 = inlined_call_operand.vmem [shape: f32[58,1], index: 0, kind: input, shape index: {}]   ;;  %s3773_s1 = inlined_call_operand.vmem [shape: f32[1392,58], index: 1, kind: input, shape index: {}]   ;;  %s3774_s2 = inlined_call_operand.vmem [shape: f32[1392,1], index: 2, kind: input, shape index: {}]   ;;  %s3775_s3 = inlined_call_operand.vmem [shape: f32[1392,1], index: 3, kind: output, shape index: {}]  }
   0x1   :  { %v195_v0 = vld [vmem:[%s3772_s0 + $0x38] sm:$0x3]  ;;  %v194_v1 = vld [vmem:[%s3772_s0 + $0x30] sm:$0xff]  ;;  %v193_v2 = vld [vmem:[%s3772_s0 + $0x28] sm:$0xff] }
   0x2   :  { %1791 = vmatpush.msk.msra.mxu2 %vm893_vm0, %v195_v0  ;;  %1792 = vmatpush.msk.msra.mxu3 %vm893_vm0, %v195_v0  ;;  %v192_v3 = vld [vmem:[%s3772_s0 + $0x20] sm:$0xff]  ;;  %v191_v4 = vld [vmem:[%s3772_s0 + $0x18] sm:$0xff]  ;;  %v190_v5 = vld [vmem:[%s3772_s0 + $0x10] sm:$0xff] }
   0x3   :  { %1615 = vmatpush.msk.msra.mxu0 %vm893_vm0, %v195_v0  ;;  %1790 = vmatpush.msk.msra.mxu1 %vm893_vm0, %v195_v0  ;;  %v189_v6 = vld [vmem:[%s3772_s0 + $0x8] sm:$0xff]  ;;  %v188_v7 = vld [vmem:[%s3772_s0] sm:$0xff]  ;;  %v100_v8 = vld [vmem:[%s3773_s1 + $0x2b0] sm:$0xff] }
   0x4   :  { %1794 = vmatpush.msra.mxu2 %v194_v1  ;;  %1795 = vmatpush.msra.mxu3 %v194_v1  ;;  %v144_v9 = vld [vmem:[%s3773_s1 + $0x410] sm:$0xff]  ;;  %v14_v10 = vld [vmem:[%s3773_s1] sm:$0xff]  ;;  %v57_v11 = vld [vmem:[%s3773_s1 + $0x158] sm:$0xff] }
   0x5   :  { %906 = vmatpush.msra.mxu0 %v194_v1  ;;  %1793 = vmatpush.msra.mxu1 %v194_v1  ;;  %v101_v12 = vld [vmem:[%s3773_s1 + $0x2b8] sm:$0xff]  ;;  %v15_v14 = vld [vmem:[%s3773_s1 + $0x8] sm:$0xff]  ;;  %v58_v15 = vld [vmem:[%s3773_s1 + $0x160] sm:$0xff] }
   0x6   :  { %1797 = vmatpush.msra.mxu2 %v193_v2  ;;  %1798 = vmatpush.msra.mxu3 %v193_v2  ;;  %v145_v13 = vld [vmem:[%s3773_s1 + $0x418] sm:$0xff]  ;;  %v102_v16 = vld [vmem:[%s3773_s1 + $0x2c0] sm:$0xff]  ;;  %v16_v18 = vld [vmem:[%s3773_s1 + $0x10] sm:$0xff] }
   0x7   :  { %907 = vmatpush.msra.mxu0 %v193_v2  ;;  %1796 = vmatpush.msra.mxu1 %v193_v2  ;;  %v146_v17 = vld [vmem:[%s3773_s1 + $0x420] sm:$0xff]  ;;  %v59_v19 = vld [vmem:[%s3773_s1 + $0x168] sm:$0xff]  ;;  %v17_v22 = vld [vmem:[%s3773_s1 + $0x18] sm:$0xff] }
   0x8   :  { %1800 = vmatpush.msra.mxu2 %v192_v3  ;;  %1801 = vmatpush.msra.mxu3 %v192_v3  ;;  %v103_v20 = vld [vmem:[%s3773_s1 + $0x2c8] sm:$0xff]  ;;  %v60_v23 = vld [vmem:[%s3773_s1 + $0x170] sm:$0xff]  ;;  %v18_v26 = vld [vmem:[%s3773_s1 + $0x20] sm:$0xff] }
   0x9   :  { %908 = vmatpush.msra.mxu0 %v192_v3  ;;  %1799 = vmatpush.msra.mxu1 %v192_v3  ;;  %v147_v21 = vld [vmem:[%s3773_s1 + $0x428] sm:$0xff]  ;;  %v104_v24 = vld [vmem:[%s3773_s1 + $0x2d0] sm:$0xff]  ;;  %v61_v27 = vld [vmem:[%s3773_s1 + $0x178] sm:$0xff] }
   0xa   :  { %1803 = vmatpush.msra.mxu2 %v191_v4  ;;  %1804 = vmatpush.msra.mxu3 %v191_v4  ;;  %v148_v25 = vld [vmem:[%s3773_s1 + $0x430] sm:$0xff]  ;;  %v105_v28 = vld [vmem:[%s3773_s1 + $0x2d8] sm:$0xff]  ;;  %v19_v30 = vld [vmem:[%s3773_s1 + $0x28] sm:$0xff] }
   0xb   :  { %909 = vmatpush.msra.mxu0 %v191_v4  ;;  %1802 = vmatpush.msra.mxu1 %v191_v4  ;;  %v149_v29 = vld [vmem:[%s3773_s1 + $0x438] sm:$0xff]  ;;  %v62_v31 = vld [vmem:[%s3773_s1 + $0x180] sm:$0xff]  ;;  %v20_v34 = vld [vmem:[%s3773_s1 + $0x30] sm:$0xff] }
   0xc   :  { %1806 = vmatpush.msra.mxu2 %v190_v5  ;;  %1807 = vmatpush.msra.mxu3 %v190_v5  ;;  %v106_v32 = vld [vmem:[%s3773_s1 + $0x2e0] sm:$0xff]  ;;  %v63_v35 = vld [vmem:[%s3773_s1 + $0x188] sm:$0xff]  ;;  %v21_v38 = vld [vmem:[%s3773_s1 + $0x38] sm:$0xff] }
   0xd   :  { %910 = vmatpush.msra.mxu0 %v190_v5  ;;  %1805 = vmatpush.msra.mxu1 %v190_v5  ;;  %v150_v33 = vld [vmem:[%s3773_s1 + $0x440] sm:$0xff]  ;;  %v107_v36 = vld [vmem:[%s3773_s1 + $0x2e8] sm:$0xff]  ;;  %v64_v39 = vld [vmem:[%s3773_s1 + $0x190] sm:$0xff] }
   0xe   :  { %1809 = vmatpush.msra.mxu2 %v189_v6  ;;  %1810 = vmatpush.msra.mxu3 %v189_v6  ;;  %v151_v37 = vld [vmem:[%s3773_s1 + $0x448] sm:$0xff]  ;;  %v108_v40 = vld [vmem:[%s3773_s1 + $0x2f0] sm:$0xff]  ;;  %v22_v42 = vld [vmem:[%s3773_s1 + $0x40] sm:$0xff] }
   0xf   :  { %911 = vmatpush.msra.mxu0 %v189_v6  ;;  %1808 = vmatpush.msra.mxu1 %v189_v6  ;;  %v152_v41 = vld [vmem:[%s3773_s1 + $0x450] sm:$0xff]  ;;  %v65_v43 = vld [vmem:[%s3773_s1 + $0x198] sm:$0xff]  ;;  %v23_v46 = vld [vmem:[%s3773_s1 + $0x48] sm:$0xff] }
  0x10   :  { %1812 = vmatpush.msra.mxu2 %v188_v7  ;;  %1813 = vmatpush.msra.mxu3 %v188_v7  ;;  %v109_v44 = vld [vmem:[%s3773_s1 + $0x2f8] sm:$0xff]  ;;  %v66_v47 = vld [vmem:[%s3773_s1 + $0x1a0] sm:$0xff]  ;;  %v24_v50 = vld [vmem:[%s3773_s1 + $0x50] sm:$0xff] }
  0x11   :  { %1702 = vmatmul.msk.f32.vlgmr.msra.gmra.mxu2 %vm370_vm1, %v100_v8  ;;  %1746 = vmatmul.msk.f32.vlgmr.msra.gmra.mxu3 %vm370_vm1, %v144_v9  ;;  %v153_v45 = vld [vmem:[%s3773_s1 + $0x458] sm:$0xff]  ;;  %v110_v48 = vld [vmem:[%s3773_s1 + $0x300] sm:$0xff]  ;;  %v67_v51 = vld [vmem:[%s3773_s1 + $0x1a8] sm:$0xff] }
  0x12   :  { %912 = vmatpush.msra.mxu0 %v188_v7  ;;  %1811 = vmatpush.msra.mxu1 %v188_v7  ;;  %v154_v49 = vld [vmem:[%s3773_s1 + $0x460] sm:$0xff]  ;;  %v111_v52 = vld [vmem:[%s3773_s1 + $0x308] sm:$0xff]  ;;  %v25_v54 = vld [vmem:[%s3773_s1 + $0x58] sm:$0xff] }
  0x13   :  { %1616 = vmatmul.msk.f32.vlgmr.msra.gmra.mxu0 %vm370_vm1, %v14_v10  ;;  %1659 = vmatmul.msk.f32.vlgmr.msra.gmra.mxu1 %vm370_vm1, %v57_v11  ;;  %v155_v53 = vld [vmem:[%s3773_s1 + $0x468] sm:$0xff]  ;;  %v68_v55 = vld [vmem:[%s3773_s1 + $0x1b0] sm:$0xff]  ;;  %v26_v58 = vld [vmem:[%s3773_s1 + $0x60] sm:$0xff] }
  0x14   :  { %v112_v56 = vld [vmem:[%s3773_s1 + $0x310] sm:$0xff]  ;;  %v69_v59 = vld [vmem:[%s3773_s1 + $0x1b8] sm:$0xff]  ;;  %v27_v62 = vld [vmem:[%s3773_s1 + $0x68] sm:$0xff] }
  0x15   :  { %v156_v57 = vld [vmem:[%s3773_s1 + $0x470] sm:$0xff]  ;;  %v113_v60 = vld [vmem:[%s3773_s1 + $0x318] sm:$0xff]  ;;  %v70_v63 = vld [vmem:[%s3773_s1 + $0x1c0] sm:$0xff] }
  0x16   :  { %v157_v61 = vld [vmem:[%s3773_s1 + $0x478] sm:$0xff]  ;;  %v114_v0 = vld [vmem:[%s3773_s1 + $0x320] sm:$0xff]  ;;  %v28_v2 = vld [vmem:[%s3773_s1 + $0x70] sm:$0xff] }
  0x17   :  { %v158_v1 = vld [vmem:[%s3773_s1 + $0x480] sm:$0xff]  ;;  %v71_v3 = vld [vmem:[%s3773_s1 + $0x1c8] sm:$0xff]  ;;  %v29_v6 = vld [vmem:[%s3773_s1 + $0x78] sm:$0xff] }
  0x18   :  { %v115_v4 = vld [vmem:[%s3773_s1 + $0x328] sm:$0xff]  ;;  %v72_v7 = vld [vmem:[%s3773_s1 + $0x1d0] sm:$0xff]  ;;  %v196_v10 = vld [vmem:[%s3774_s2] sm:$0xff] }
  0x19   :  { %1703 = vmatmul.msk.f32.gmra.mxu2 %vm370_vm1, %v101_v12  ;;  %1747 = vmatmul.msk.f32.gmra.mxu3 %vm370_vm1, %v145_v13  ;;  %v159_v5 = vld [vmem:[%s3773_s1 + $0x488] sm:$0xff]  ;;  %v116_v8 = vld [vmem:[%s3773_s1 + $0x330] sm:$0xff]  ;;  %v239_v11 = vld [vmem:[%s3774_s2 + $0x158] sm:$0xff] }
  0x1a   :  { %v160_v9 = vld [vmem:[%s3773_s1 + $0x490] sm:$0xff] }
  0x1b   :  { %1617 = vmatmul.msk.f32.gmra.mxu0 %vm370_vm1, %v15_v14  ;;  %1660 = vmatmul.msk.f32.gmra.mxu1 %vm370_vm1, %v58_v15  ;;  %v30_v14 = vld [vmem:[%s3773_s1 + $0x80] sm:$0xff]  ;;  %v73_v15 = vld [vmem:[%s3773_s1 + $0x1d8] sm:$0xff] }
  0x21   :  { %1704 = vmatmul.msk.f32.gmra.mxu2 %vm370_vm1, %v102_v16  ;;  %1748 = vmatmul.msk.f32.gmra.mxu3 %vm370_vm1, %v146_v17 }
  0x23   :  { %1618 = vmatmul.msk.f32.gmra.mxu0 %vm370_vm1, %v16_v18  ;;  %1661 = vmatmul.msk.f32.gmra.mxu1 %vm370_vm1, %v59_v19  ;;  %v282_v18 = vld [vmem:[%s3774_s2 + $0x2b0] sm:$0xff] }
  0x24   :  { %v326_v19 = vld [vmem:[%s3774_s2 + $0x410] sm:$0xff] }
  0x29   :  { %1705 = vmatmul.msk.f32.gmra.mxu2 %vm370_vm1, %v103_v20  ;;  %1749 = vmatmul.msk.f32.gmra.mxu3 %vm370_vm1, %v147_v21 }
  0x2b   :  { %1619 = vmatmul.msk.f32.gmra.mxu0 %vm370_vm1, %v17_v22  ;;  %1662 = vmatmul.msk.f32.gmra.mxu1 %vm370_vm1, %v60_v23 }
  0x31   :  { %1706 = vmatmul.msk.f32.gmra.mxu2 %vm370_vm1, %v104_v24  ;;  %1750 = vmatmul.msk.f32.gmra.mxu3 %vm370_vm1, %v148_v25  ;;  %v117_v24 = vld [vmem:[%s3773_s1 + $0x338] sm:$0xff] }
  0x32   :  { %v161_v25 = vld [vmem:[%s3773_s1 + $0x498] sm:$0xff] }
  0x33   :  { %1620 = vmatmul.msk.f32.gmra.mxu0 %vm370_vm1, %v18_v26  ;;  %1663 = vmatmul.msk.f32.gmra.mxu1 %vm370_vm1, %v61_v27  ;;  %v197_v26 = vld [vmem:[%s3774_s2 + $0x8] sm:$0xff]  ;;  %v240_v27 = vld [vmem:[%s3774_s2 + $0x160] sm:$0xff] }
  0x39   :  { %1707 = vmatmul.msk.f32.gmra.mxu2 %vm370_vm1, %v105_v28  ;;  %1751 = vmatmul.msk.f32.gmra.mxu3 %vm370_vm1, %v149_v29 }
  0x3b   :  { %1621 = vmatmul.msk.f32.gmra.mxu0 %vm370_vm1, %v19_v30  ;;  %1664 = vmatmul.msk.f32.gmra.mxu1 %vm370_vm1, %v62_v31  ;;  %v31_v30 = vld [vmem:[%s3773_s1 + $0x88] sm:$0xff]  ;;  %v74_v31 = vld [vmem:[%s3773_s1 + $0x1e0] sm:$0xff] }
  0x41   :  { %1708 = vmatmul.msk.f32.gmra.mxu2 %vm370_vm1, %v106_v32  ;;  %1752 = vmatmul.msk.f32.gmra.mxu3 %vm370_vm1, %v150_v33 }
  0x43   :  { %1622 = vmatmul.msk.f32.gmra.mxu0 %vm370_vm1, %v20_v34  ;;  %1665 = vmatmul.msk.f32.gmra.mxu1 %vm370_vm1, %v63_v35  ;;  %v283_v34 = vld [vmem:[%s3774_s2 + $0x2b8] sm:$0xff] }
  0x44   :  { %v327_v35 = vld [vmem:[%s3774_s2 + $0x418] sm:$0xff] }
  0x49   :  { %1709 = vmatmul.msk.f32.gmra.mxu2 %vm370_vm1, %v107_v36  ;;  %1753 = vmatmul.msk.f32.gmra.mxu3 %vm370_vm1, %v151_v37 }
  0x4b   :  { %1623 = vmatmul.msk.f32.gmra.mxu0 %vm370_vm1, %v21_v38  ;;  %1666 = vmatmul.msk.f32.gmra.mxu1 %vm370_vm1, %v64_v39 }
  0x51   :  { %1710 = vmatmul.msk.f32.gmra.mxu2 %vm370_vm1, %v108_v40  ;;  %1754 = vmatmul.msk.f32.gmra.mxu3 %vm370_vm1, %v152_v41  ;;  %v118_v40 = vld [vmem:[%s3773_s1 + $0x340] sm:$0xff] }
  0x52   :  { %v162_v41 = vld [vmem:[%s3773_s1 + $0x4a0] sm:$0xff] }
  0x53   :  { %1624 = vmatmul.msk.f32.gmra.mxu0 %vm370_vm1, %v22_v42  ;;  %1667 = vmatmul.msk.f32.gmra.mxu1 %vm370_vm1, %v65_v43  ;;  %v198_v42 = vld [vmem:[%s3774_s2 + $0x10] sm:$0xff]  ;;  %v241_v43 = vld [vmem:[%s3774_s2 + $0x168] sm:$0xff] }
  0x59   :  { %1711 = vmatmul.msk.f32.gmra.mxu2 %vm370_vm1, %v109_v44  ;;  %1755 = vmatmul.msk.f32.gmra.mxu3 %vm370_vm1, %v153_v45 }
  0x5b   :  { %1625 = vmatmul.msk.f32.gmra.mxu0 %vm370_vm1, %v23_v46  ;;  %1668 = vmatmul.msk.f32.gmra.mxu1 %vm370_vm1, %v66_v47  ;;  %v32_v46 = vld [vmem:[%s3773_s1 + $0x90] sm:$0xff]  ;;  %v75_v47 = vld [vmem:[%s3773_s1 + $0x1e8] sm:$0xff] }
  0x61   :  { %1712 = vmatmul.msk.f32.gmra.mxu2 %vm370_vm1, %v110_v48  ;;  %1756 = vmatmul.msk.f32.gmra.mxu3 %vm370_vm1, %v154_v49 }
  0x63   :  { %1626 = vmatmul.msk.f32.gmra.mxu0 %vm370_vm1, %v24_v50  ;;  %1669 = vmatmul.msk.f32.gmra.mxu1 %vm370_vm1, %v67_v51  ;;  %v284_v50 = vld [vmem:[%s3774_s2 + $0x2c0] sm:$0xff] }
  0x64   :  { %v328_v51 = vld [vmem:[%s3774_s2 + $0x420] sm:$0xff] }
  0x69   :  { %1713 = vmatmul.msk.f32.gmra.mxu2 %vm370_vm1, %v111_v52  ;;  %1757 = vmatmul.msk.f32.gmra.mxu3 %vm370_vm1, %v155_v53 }
  0x6b   :  { %1627 = vmatmul.msk.f32.gmra.mxu0 %vm370_vm1, %v25_v54  ;;  %1670 = vmatmul.msk.f32.gmra.mxu1 %vm370_vm1, %v68_v55 }
  0x71   :  { %1714 = vmatmul.msk.f32.gmra.mxu2 %vm370_vm1, %v112_v56  ;;  %1758 = vmatmul.msk.f32.gmra.mxu3 %vm370_vm1, %v156_v57  ;;  %v119_v56 = vld [vmem:[%s3773_s1 + $0x348] sm:$0xff] }
  0x72   :  { %v163_v57 = vld [vmem:[%s3773_s1 + $0x4a8] sm:$0xff] }
  0x73   :  { %1628 = vmatmul.msk.f32.gmra.mxu0 %vm370_vm1, %v26_v58  ;;  %1671 = vmatmul.msk.f32.gmra.mxu1 %vm370_vm1, %v69_v59  ;;  %v199_v58 = vld [vmem:[%s3774_s2 + $0x18] sm:$0xff]  ;;  %v242_v59 = vld [vmem:[%s3774_s2 + $0x170] sm:$0xff] }
  0x79   :  { %1715 = vmatmul.msk.f32.gmra.mxu2 %vm370_vm1, %v113_v60  ;;  %1759 = vmatmul.msk.f32.gmra.mxu3 %vm370_vm1, %v157_v61 }
  0x7b   :  { %1629 = vmatmul.msk.f32.gmra.mxu0 %vm370_vm1, %v27_v62  ;;  %1672 = vmatmul.msk.f32.gmra.mxu1 %vm370_vm1, %v70_v63  ;;  %v33_v62 = vld [vmem:[%s3773_s1 + $0x98] sm:$0xff]  ;;  %v76_v63 = vld [vmem:[%s3773_s1 + $0x1f0] sm:$0xff] }
  0x81   :  { %1716 = vmatmul.msk.f32.gmra.mxu2 %vm370_vm1, %v114_v0  ;;  %1760 = vmatmul.msk.f32.gmra.mxu3 %vm370_vm1, %v158_v1 }
  0x83   :  { %1630 = vmatmul.msk.f32.gmra.mxu0 %vm370_vm1, %v28_v2  ;;  %1673 = vmatmul.msk.f32.gmra.mxu1 %vm370_vm1, %v71_v3  ;;  %v285_v2 = vld [vmem:[%s3774_s2 + $0x2c8] sm:$0xff] }
  0x84   :  { %v329_v3 = vld [vmem:[%s3774_s2 + $0x428] sm:$0xff] }
  0x89   :  { %1717 = vmatmul.msk.f32.gmra.mxu2 %vm370_vm1, %v115_v4  ;;  %1761 = vmatmul.msk.f32.gmra.mxu3 %vm370_vm1, %v159_v5 }
  0x8b   :  { %1631 = vmatmul.msk.f32.gmra.mxu0 %vm370_vm1, %v29_v6  ;;  %1674 = vmatmul.msk.f32.gmra.mxu1 %vm370_vm1, %v72_v7 }
  0x90   :  { %v914_v12 = vpop.f32.mrf.mxu0  ;;  %v1043_v13 = vpop.f32.mrf.mxu1 }
  0x91   :  { %1718 = vmatmul.msk.f32.gmra.mxu2 %vm370_vm1, %v116_v8  ;;  %1762 = vmatmul.msk.f32.gmra.mxu3 %vm370_vm1, %v160_v9  ;;  %v915_v16 = vadd.f32 %v914_v12, %v196_v10  ;;  %v1044_v17 = vadd.f32 %v1043_v13, %v239_v11  ;;  %v120_v8 = vld [vmem:[%s3773_s1 + $0x350] sm:$0xff]  ;;  %v200_v10 = vld [vmem:[%s3774_s2 + $0x20] sm:$0xff]  ;;  %v243_v11 = vld [vmem:[%s3774_s2 + $0x178] sm:$0xff] }
  0x92   :  { %v164_v9 = vld [vmem:[%s3773_s1 + $0x4b0] sm:$0xff] }
  0x93   :  { %1437 = vst.msk [vmem:[%s3775_s3] sm:$0xff] %vm1436_vm2, %v915_v16  ;;  %1632 = vmatmul.msk.f32.gmra.mxu0 %vm370_vm1, %v30_v14  ;;  %1675 = vmatmul.msk.f32.gmra.mxu1 %vm370_vm1, %v73_v15  ;;  %v34_v14 = vld [vmem:[%s3773_s1 + $0xa0] sm:$0xff]  ;;  %v77_v15 = vld [vmem:[%s3773_s1 + $0x1f8] sm:$0xff] }
  0x94   :  { %v1172_v20 = vpop.f32.mrf.mxu2  ;;  %v1304_v21 = vpop.f32.mrf.mxu3  ;;  %1480 = vst.msk [vmem:[%s3775_s3 + $0x158] sm:$0xff] %vm1436_vm2, %v1044_v17 }
  0x95   :  { %v1173_v22 = vadd.f32 %v1172_v20, %v282_v18  ;;  %v1305_v23 = vadd.f32 %v1304_v21, %v326_v19  ;;  %v286_v18 = vld [vmem:[%s3774_s2 + $0x2d0] sm:$0xff] }
  0x96   :  { %v330_v19 = vld [vmem:[%s3774_s2 + $0x430] sm:$0xff] }
  0x97   :  { %1523 = vst.msk [vmem:[%s3775_s3 + $0x2b0] sm:$0xff] %vm1436_vm2, %v1173_v22 }
  0x98   :  { %1567 = vst.msk [vmem:[%s3775_s3 + $0x410] sm:$0xff] %vm1436_vm2, %v1305_v23  ;;  %v917_v28 = vpop.f32.mrf.mxu0  ;;  %v1046_v29 = vpop.f32.mrf.mxu1 }
  0x99   :  { %1719 = vmatmul.msk.f32.gmra.mxu2 %vm370_vm1, %v117_v24  ;;  %1763 = vmatmul.msk.f32.gmra.mxu3 %vm370_vm1, %v161_v25  ;;  %v918_v32 = vadd.f32 %v917_v28, %v197_v26  ;;  %v1047_v33 = vadd.f32 %v1046_v29, %v240_v27  ;;  %v121_v24 = vld [vmem:[%s3773_s1 + $0x358] sm:$0xff]  ;;  %v201_v26 = vld [vmem:[%s3774_s2 + $0x28] sm:$0xff]  ;;  %v244_v27 = vld [vmem:[%s3774_s2 + $0x180] sm:$0xff] }
  0x9a   :  { %v165_v25 = vld [vmem:[%s3773_s1 + $0x4b8] sm:$0xff] }
  0x9b   :  { %1438 = vst.msk [vmem:[%s3775_s3 + $0x8] sm:$0xff] %vm1436_vm2, %v918_v32  ;;  %1633 = vmatmul.msk.f32.gmra.mxu0 %vm370_vm1, %v31_v30  ;;  %1676 = vmatmul.msk.f32.gmra.mxu1 %vm370_vm1, %v74_v31  ;;  %v35_v30 = vld [vmem:[%s3773_s1 + $0xa8] sm:$0xff]  ;;  %v78_v31 = vld [vmem:[%s3773_s1 + $0x200] sm:$0xff] }
  0x9c   :  { %v1175_v36 = vpop.f32.mrf.mxu2  ;;  %v1307_v37 = vpop.f32.mrf.mxu3  ;;  %1481 = vst.msk [vmem:[%s3775_s3 + $0x160] sm:$0xff] %vm1436_vm2, %v1047_v33 }
  0x9d   :  { %v1176_v38 = vadd.f32 %v1175_v36, %v283_v34  ;;  %v1308_v39 = vadd.f32 %v1307_v37, %v327_v35  ;;  %v287_v34 = vld [vmem:[%s3774_s2 + $0x2d8] sm:$0xff] }
  0x9e   :  { %v331_v35 = vld [vmem:[%s3774_s2 + $0x438] sm:$0xff] }
  0x9f   :  { %1524 = vst.msk [vmem:[%s3775_s3 + $0x2b8] sm:$0xff] %vm1436_vm2, %v1176_v38 }
  0xa0   :  { %1568 = vst.msk [vmem:[%s3775_s3 + $0x418] sm:$0xff] %vm1436_vm2, %v1308_v39  ;;  %v920_v44 = vpop.f32.mrf.mxu0  ;;  %v1049_v45 = vpop.f32.mrf.mxu1 }
  0xa1   :  { %1720 = vmatmul.msk.f32.gmra.mxu2 %vm370_vm1, %v118_v40  ;;  %1764 = vmatmul.msk.f32.gmra.mxu3 %vm370_vm1, %v162_v41  ;;  %v921_v48 = vadd.f32 %v920_v44, %v198_v42  ;;  %v1050_v49 = vadd.f32 %v1049_v45, %v241_v43  ;;  %v122_v40 = vld [vmem:[%s3773_s1 + $0x360] sm:$0xff]  ;;  %v202_v42 = vld [vmem:[%s3774_s2 + $0x30] sm:$0xff]  ;;  %v245_v43 = vld [vmem:[%s3774_s2 + $0x188] sm:$0xff] }
  0xa2   :  { %v166_v41 = vld [vmem:[%s3773_s1 + $0x4c0] sm:$0xff] }
  0xa3   :  { %1439 = vst.msk [vmem:[%s3775_s3 + $0x10] sm:$0xff] %vm1436_vm2, %v921_v48  ;;  %1634 = vmatmul.msk.f32.gmra.mxu0 %vm370_vm1, %v32_v46  ;;  %1677 = vmatmul.msk.f32.gmra.mxu1 %vm370_vm1, %v75_v47  ;;  %v36_v46 = vld [vmem:[%s3773_s1 + $0xb0] sm:$0xff]  ;;  %v79_v47 = vld [vmem:[%s3773_s1 + $0x208] sm:$0xff] }
  0xa4   :  { %v1178_v52 = vpop.f32.mrf.mxu2  ;;  %v1310_v53 = vpop.f32.mrf.mxu3  ;;  %1482 = vst.msk [vmem:[%s3775_s3 + $0x168] sm:$0xff] %vm1436_vm2, %v1050_v49 }
  0xa5   :  { %v1179_v54 = vadd.f32 %v1178_v52, %v284_v50  ;;  %v1311_v55 = vadd.f32 %v1310_v53, %v328_v51  ;;  %v288_v50 = vld [vmem:[%s3774_s2 + $0x2e0] sm:$0xff] }
  0xa6   :  { %v332_v51 = vld [vmem:[%s3774_s2 + $0x440] sm:$0xff] }
  0xa7   :  { %1525 = vst.msk [vmem:[%s3775_s3 + $0x2c0] sm:$0xff] %vm1436_vm2, %v1179_v54 }
  0xa8   :  { %1569 = vst.msk [vmem:[%s3775_s3 + $0x420] sm:$0xff] %vm1436_vm2, %v1311_v55  ;;  %v923_v60 = vpop.f32.mrf.mxu0  ;;  %v1052_v61 = vpop.f32.mrf.mxu1 }
  0xa9   :  { %1721 = vmatmul.msk.f32.gmra.mxu2 %vm370_vm1, %v119_v56  ;;  %1765 = vmatmul.msk.f32.gmra.mxu3 %vm370_vm1, %v163_v57  ;;  %v924_v0 = vadd.f32 %v923_v60, %v199_v58  ;;  %v1053_v1 = vadd.f32 %v1052_v61, %v242_v59  ;;  %v123_v56 = vld [vmem:[%s3773_s1 + $0x368] sm:$0xff]  ;;  %v203_v58 = vld [vmem:[%s3774_s2 + $0x38] sm:$0xff]  ;;  %v246_v59 = vld [vmem:[%s3774_s2 + $0x190] sm:$0xff] }
  0xaa   :  { %v167_v57 = vld [vmem:[%s3773_s1 + $0x4c8] sm:$0xff] }
  0xab   :  { %1440 = vst.msk [vmem:[%s3775_s3 + $0x18] sm:$0xff] %vm1436_vm2, %v924_v0  ;;  %1635 = vmatmul.msk.f32.gmra.mxu0 %vm370_vm1, %v33_v62  ;;  %1678 = vmatmul.msk.f32.gmra.mxu1 %vm370_vm1, %v76_v63  ;;  %v37_v62 = vld [vmem:[%s3773_s1 + $0xb8] sm:$0xff]  ;;  %v80_v63 = vld [vmem:[%s3773_s1 + $0x210] sm:$0xff] }
  0xac   :  { %v1181_v4 = vpop.f32.mrf.mxu2  ;;  %v1313_v5 = vpop.f32.mrf.mxu3  ;;  %1483 = vst.msk [vmem:[%s3775_s3 + $0x170] sm:$0xff] %vm1436_vm2, %v1053_v1 }
  0xad   :  { %v1182_v6 = vadd.f32 %v1181_v4, %v285_v2  ;;  %v1314_v7 = vadd.f32 %v1313_v5, %v329_v3  ;;  %v289_v2 = vld [vmem:[%s3774_s2 + $0x2e8] sm:$0xff] }
  0xae   :  { %v333_v3 = vld [vmem:[%s3774_s2 + $0x448] sm:$0xff] }
  0xaf   :  { %1526 = vst.msk [vmem:[%s3775_s3 + $0x2c8] sm:$0xff] %vm1436_vm2, %v1182_v6 }
  0xb0   :  { %1570 = vst.msk [vmem:[%s3775_s3 + $0x428] sm:$0xff] %vm1436_vm2, %v1314_v7  ;;  %v926_v12 = vpop.f32.mrf.mxu0  ;;  %v1055_v13 = vpop.f32.mrf.mxu1 }
  0xb1   :  { %1722 = vmatmul.msk.f32.gmra.mxu2 %vm370_vm1, %v120_v8  ;;  %1766 = vmatmul.msk.f32.gmra.mxu3 %vm370_vm1, %v164_v9  ;;  %v927_v16 = vadd.f32 %v926_v12, %v200_v10  ;;  %v1056_v17 = vadd.f32 %v1055_v13, %v243_v11  ;;  %v124_v8 = vld [vmem:[%s3773_s1 + $0x370] sm:$0xff]  ;;  %v204_v10 = vld [vmem:[%s3774_s2 + $0x40] sm:$0xff]  ;;  %v247_v11 = vld [vmem:[%s3774_s2 + $0x198] sm:$0xff] }
  0xb2   :  { %v168_v9 = vld [vmem:[%s3773_s1 + $0x4d0] sm:$0xff] }
  0xb3   :  { %1441 = vst.msk [vmem:[%s3775_s3 + $0x20] sm:$0xff] %vm1436_vm2, %v927_v16  ;;  %1636 = vmatmul.msk.f32.gmra.mxu0 %vm370_vm1, %v34_v14  ;;  %1679 = vmatmul.msk.f32.gmra.mxu1 %vm370_vm1, %v77_v15  ;;  %v38_v14 = vld [vmem:[%s3773_s1 + $0xc0] sm:$0xff]  ;;  %v81_v15 = vld [vmem:[%s3773_s1 + $0x218] sm:$0xff] }
  0xb4   :  { %v1184_v20 = vpop.f32.mrf.mxu2  ;;  %v1316_v21 = vpop.f32.mrf.mxu3  ;;  %1484 = vst.msk [vmem:[%s3775_s3 + $0x178] sm:$0xff] %vm1436_vm2, %v1056_v17 }
  0xb5   :  { %v1185_v22 = vadd.f32 %v1184_v20, %v286_v18  ;;  %v1317_v23 = vadd.f32 %v1316_v21, %v330_v19  ;;  %v290_v18 = vld [vmem:[%s3774_s2 + $0x2f0] sm:$0xff] }
  0xb6   :  { %v334_v19 = vld [vmem:[%s3774_s2 + $0x450] sm:$0xff] }
  0xb7   :  { %1527 = vst.msk [vmem:[%s3775_s3 + $0x2d0] sm:$0xff] %vm1436_vm2, %v1185_v22 }
  0xb8   :  { %1571 = vst.msk [vmem:[%s3775_s3 + $0x430] sm:$0xff] %vm1436_vm2, %v1317_v23  ;;  %v929_v28 = vpop.f32.mrf.mxu0  ;;  %v1058_v29 = vpop.f32.mrf.mxu1 }
  0xb9   :  { %1723 = vmatmul.msk.f32.gmra.mxu2 %vm370_vm1, %v121_v24  ;;  %1767 = vmatmul.msk.f32.gmra.mxu3 %vm370_vm1, %v165_v25  ;;  %v930_v32 = vadd.f32 %v929_v28, %v201_v26  ;;  %v1059_v33 = vadd.f32 %v1058_v29, %v244_v27  ;;  %v125_v24 = vld [vmem:[%s3773_s1 + $0x378] sm:$0xff]  ;;  %v205_v26 = vld [vmem:[%s3774_s2 + $0x48] sm:$0xff]  ;;  %v248_v27 = vld [vmem:[%s3774_s2 + $0x1a0] sm:$0xff] }
  0xba   :  { %v169_v25 = vld [vmem:[%s3773_s1 + $0x4d8] sm:$0xff] }
  0xbb   :  { %1442 = vst.msk [vmem:[%s3775_s3 + $0x28] sm:$0xff] %vm1436_vm2, %v930_v32  ;;  %1637 = vmatmul.msk.f32.gmra.mxu0 %vm370_vm1, %v35_v30  ;;  %1680 = vmatmul.msk.f32.gmra.mxu1 %vm370_vm1, %v78_v31  ;;  %v39_v30 = vld [vmem:[%s3773_s1 + $0xc8] sm:$0xff]  ;;  %v82_v31 = vld [vmem:[%s3773_s1 + $0x220] sm:$0xff] }
  0xbc   :  { %v1187_v36 = vpop.f32.mrf.mxu2  ;;  %v1319_v37 = vpop.f32.mrf.mxu3  ;;  %1485 = vst.msk [vmem:[%s3775_s3 + $0x180] sm:$0xff] %vm1436_vm2, %v1059_v33 }
  0xbd   :  { %v1188_v38 = vadd.f32 %v1187_v36, %v287_v34  ;;  %v1320_v39 = vadd.f32 %v1319_v37, %v331_v35  ;;  %v291_v34 = vld [vmem:[%s3774_s2 + $0x2f8] sm:$0xff] }
  0xbe   :  { %v335_v35 = vld [vmem:[%s3774_s2 + $0x458] sm:$0xff] }
  0xbf   :  { %1528 = vst.msk [vmem:[%s3775_s3 + $0x2d8] sm:$0xff] %vm1436_vm2, %v1188_v38 }
  0xc0   :  { %1572 = vst.msk [vmem:[%s3775_s3 + $0x438] sm:$0xff] %vm1436_vm2, %v1320_v39  ;;  %v932_v44 = vpop.f32.mrf.mxu0  ;;  %v1061_v45 = vpop.f32.mrf.mxu1 }
  0xc1   :  { %1724 = vmatmul.msk.f32.gmra.mxu2 %vm370_vm1, %v122_v40  ;;  %1768 = vmatmul.msk.f32.gmra.mxu3 %vm370_vm1, %v166_v41  ;;  %v933_v48 = vadd.f32 %v932_v44, %v202_v42  ;;  %v1062_v49 = vadd.f32 %v1061_v45, %v245_v43  ;;  %v126_v40 = vld [vmem:[%s3773_s1 + $0x380] sm:$0xff]  ;;  %v206_v42 = vld [vmem:[%s3774_s2 + $0x50] sm:$0xff]  ;;  %v249_v43 = vld [vmem:[%s3774_s2 + $0x1a8] sm:$0xff] }
  0xc2   :  { %v170_v41 = vld [vmem:[%s3773_s1 + $0x4e0] sm:$0xff] }
  0xc3   :  { %1443 = vst.msk [vmem:[%s3775_s3 + $0x30] sm:$0xff] %vm1436_vm2, %v933_v48  ;;  %1638 = vmatmul.msk.f32.gmra.mxu0 %vm370_vm1, %v36_v46  ;;  %1681 = vmatmul.msk.f32.gmra.mxu1 %vm370_vm1, %v79_v47  ;;  %v40_v46 = vld [vmem:[%s3773_s1 + $0xd0] sm:$0xff]  ;;  %v83_v47 = vld [vmem:[%s3773_s1 + $0x228] sm:$0xff] }
  0xc4   :  { %v1190_v52 = vpop.f32.mrf.mxu2  ;;  %v1322_v53 = vpop.f32.mrf.mxu3  ;;  %1486 = vst.msk [vmem:[%s3775_s3 + $0x188] sm:$0xff] %vm1436_vm2, %v1062_v49 }
  0xc5   :  { %v1191_v54 = vadd.f32 %v1190_v52, %v288_v50  ;;  %v1323_v55 = vadd.f32 %v1322_v53, %v332_v51  ;;  %v292_v50 = vld [vmem:[%s3774_s2 + $0x300] sm:$0xff] }
  0xc6   :  { %v336_v51 = vld [vmem:[%s3774_s2 + $0x460] sm:$0xff] }
  0xc7   :  { %1529 = vst.msk [vmem:[%s3775_s3 + $0x2e0] sm:$0xff] %vm1436_vm2, %v1191_v54 }
  0xc8   :  { %1573 = vst.msk [vmem:[%s3775_s3 + $0x440] sm:$0xff] %vm1436_vm2, %v1323_v55  ;;  %v935_v60 = vpop.f32.mrf.mxu0  ;;  %v1064_v61 = vpop.f32.mrf.mxu1 }
  0xc9   :  { %1725 = vmatmul.msk.f32.gmra.mxu2 %vm370_vm1, %v123_v56  ;;  %1769 = vmatmul.msk.f32.gmra.mxu3 %vm370_vm1, %v167_v57  ;;  %v936_v0 = vadd.f32 %v935_v60, %v203_v58  ;;  %v1065_v1 = vadd.f32 %v1064_v61, %v246_v59  ;;  %v127_v56 = vld [vmem:[%s3773_s1 + $0x388] sm:$0xff]  ;;  %v207_v58 = vld [vmem:[%s3774_s2 + $0x58] sm:$0xff]  ;;  %v250_v59 = vld [vmem:[%s3774_s2 + $0x1b0] sm:$0xff] }
  0xca   :  { %v171_v57 = vld [vmem:[%s3773_s1 + $0x4e8] sm:$0xff] }
  0xcb   :  { %1444 = vst.msk [vmem:[%s3775_s3 + $0x38] sm:$0xff] %vm1436_vm2, %v936_v0  ;;  %1639 = vmatmul.msk.f32.gmra.mxu0 %vm370_vm1, %v37_v62  ;;  %1682 = vmatmul.msk.f32.gmra.mxu1 %vm370_vm1, %v80_v63  ;;  %v41_v62 = vld [vmem:[%s3773_s1 + $0xd8] sm:$0xff]  ;;  %v84_v63 = vld [vmem:[%s3773_s1 + $0x230] sm:$0xff] }
  0xcc   :  { %v1193_v4 = vpop.f32.mrf.mxu2  ;;  %v1325_v5 = vpop.f32.mrf.mxu3  ;;  %1487 = vst.msk [vmem:[%s3775_s3 + $0x190] sm:$0xff] %vm1436_vm2, %v1065_v1 }
  0xcd   :  { %v1194_v6 = vadd.f32 %v1193_v4, %v289_v2  ;;  %v1326_v7 = vadd.f32 %v1325_v5, %v333_v3  ;;  %v293_v2 = vld [vmem:[%s3774_s2 + $0x308] sm:$0xff] }
  0xce   :  { %v337_v3 = vld [vmem:[%s3774_s2 + $0x468] sm:$0xff] }
  0xcf   :  { %1530 = vst.msk [vmem:[%s3775_s3 + $0x2e8] sm:$0xff] %vm1436_vm2, %v1194_v6 }
  0xd0   :  { %1574 = vst.msk [vmem:[%s3775_s3 + $0x448] sm:$0xff] %vm1436_vm2, %v1326_v7  ;;  %v938_v12 = vpop.f32.mrf.mxu0  ;;  %v1067_v13 = vpop.f32.mrf.mxu1 }
  0xd1   :  { %1726 = vmatmul.msk.f32.gmra.mxu2 %vm370_vm1, %v124_v8  ;;  %1770 = vmatmul.msk.f32.gmra.mxu3 %vm370_vm1, %v168_v9  ;;  %v939_v16 = vadd.f32 %v938_v12, %v204_v10  ;;  %v1068_v17 = vadd.f32 %v1067_v13, %v247_v11  ;;  %v128_v8 = vld [vmem:[%s3773_s1 + $0x390] sm:$0xff]  ;;  %v208_v10 = vld [vmem:[%s3774_s2 + $0x60] sm:$0xff]  ;;  %v251_v11 = vld [vmem:[%s3774_s2 + $0x1b8] sm:$0xff] }
  0xd2   :  { %v172_v9 = vld [vmem:[%s3773_s1 + $0x4f0] sm:$0xff] }
  0xd3   :  { %1445 = vst.msk [vmem:[%s3775_s3 + $0x40] sm:$0xff] %vm1436_vm2, %v939_v16  ;;  %1640 = vmatmul.msk.f32.gmra.mxu0 %vm370_vm1, %v38_v14  ;;  %1683 = vmatmul.msk.f32.gmra.mxu1 %vm370_vm1, %v81_v15  ;;  %v42_v14 = vld [vmem:[%s3773_s1 + $0xe0] sm:$0xff]  ;;  %v85_v15 = vld [vmem:[%s3773_s1 + $0x238] sm:$0xff] }
  0xd4   :  { %v1196_v20 = vpop.f32.mrf.mxu2  ;;  %v1328_v21 = vpop.f32.mrf.mxu3  ;;  %1488 = vst.msk [vmem:[%s3775_s3 + $0x198] sm:$0xff] %vm1436_vm2, %v1068_v17 }
  0xd5   :  { %v1197_v22 = vadd.f32 %v1196_v20, %v290_v18  ;;  %v1329_v23 = vadd.f32 %v1328_v21, %v334_v19  ;;  %v294_v18 = vld [vmem:[%s3774_s2 + $0x310] sm:$0xff] }
  0xd6   :  { %v338_v19 = vld [vmem:[%s3774_s2 + $0x470] sm:$0xff] }
  0xd7   :  { %1531 = vst.msk [vmem:[%s3775_s3 + $0x2f0] sm:$0xff] %vm1436_vm2, %v1197_v22 }
  0xd8   :  { %1575 = vst.msk [vmem:[%s3775_s3 + $0x450] sm:$0xff] %vm1436_vm2, %v1329_v23  ;;  %v941_v28 = vpop.f32.mrf.mxu0  ;;  %v1070_v29 = vpop.f32.mrf.mxu1 }
  0xd9   :  { %1727 = vmatmul.msk.f32.gmra.mxu2 %vm370_vm1, %v125_v24  ;;  %1771 = vmatmul.msk.f32.gmra.mxu3 %vm370_vm1, %v169_v25  ;;  %v942_v32 = vadd.f32 %v941_v28, %v205_v26  ;;  %v1071_v33 = vadd.f32 %v1070_v29, %v248_v27  ;;  %v129_v24 = vld [vmem:[%s3773_s1 + $0x398] sm:$0xff]  ;;  %v209_v26 = vld [vmem:[%s3774_s2 + $0x68] sm:$0xff]  ;;  %v252_v27 = vld [vmem:[%s3774_s2 + $0x1c0] sm:$0xff] }
  0xda   :  { %v173_v25 = vld [vmem:[%s3773_s1 + $0x4f8] sm:$0xff] }
  0xdb   :  { %1446 = vst.msk [vmem:[%s3775_s3 + $0x48] sm:$0xff] %vm1436_vm2, %v942_v32  ;;  %1641 = vmatmul.msk.f32.gmra.mxu0 %vm370_vm1, %v39_v30  ;;  %1684 = vmatmul.msk.f32.gmra.mxu1 %vm370_vm1, %v82_v31  ;;  %v43_v30 = vld [vmem:[%s3773_s1 + $0xe8] sm:$0xff]  ;;  %v86_v31 = vld [vmem:[%s3773_s1 + $0x240] sm:$0xff] }
  0xdc   :  { %v1199_v36 = vpop.f32.mrf.mxu2  ;;  %v1331_v37 = vpop.f32.mrf.mxu3  ;;  %1489 = vst.msk [vmem:[%s3775_s3 + $0x1a0] sm:$0xff] %vm1436_vm2, %v1071_v33 }
  0xdd   :  { %v1200_v38 = vadd.f32 %v1199_v36, %v291_v34  ;;  %v1332_v39 = vadd.f32 %v1331_v37, %v335_v35  ;;  %v295_v34 = vld [vmem:[%s3774_s2 + $0x318] sm:$0xff] }
  0xde   :  { %v339_v35 = vld [vmem:[%s3774_s2 + $0x478] sm:$0xff] }
  0xdf   :  { %1532 = vst.msk [vmem:[%s3775_s3 + $0x2f8] sm:$0xff] %vm1436_vm2, %v1200_v38 }
  0xe0   :  { %1576 = vst.msk [vmem:[%s3775_s3 + $0x458] sm:$0xff] %vm1436_vm2, %v1332_v39  ;;  %v944_v44 = vpop.f32.mrf.mxu0  ;;  %v1073_v45 = vpop.f32.mrf.mxu1 }
  0xe1   :  { %1728 = vmatmul.msk.f32.gmra.mxu2 %vm370_vm1, %v126_v40  ;;  %1772 = vmatmul.msk.f32.gmra.mxu3 %vm370_vm1, %v170_v41  ;;  %v945_v48 = vadd.f32 %v944_v44, %v206_v42  ;;  %v1074_v49 = vadd.f32 %v1073_v45, %v249_v43  ;;  %v130_v40 = vld [vmem:[%s3773_s1 + $0x3a0] sm:$0xff]  ;;  %v210_v42 = vld [vmem:[%s3774_s2 + $0x70] sm:$0xff]  ;;  %v253_v43 = vld [vmem:[%s3774_s2 + $0x1c8] sm:$0xff] }
  0xe2   :  { %v174_v41 = vld [vmem:[%s3773_s1 + $0x500] sm:$0xff] }
  0xe3   :  { %1447 = vst.msk [vmem:[%s3775_s3 + $0x50] sm:$0xff] %vm1436_vm2, %v945_v48  ;;  %1642 = vmatmul.msk.f32.gmra.mxu0 %vm370_vm1, %v40_v46  ;;  %1685 = vmatmul.msk.f32.gmra.mxu1 %vm370_vm1, %v83_v47  ;;  %v44_v46 = vld [vmem:[%s3773_s1 + $0xf0] sm:$0xff]  ;;  %v87_v47 = vld [vmem:[%s3773_s1 + $0x248] sm:$0xff] }
  0xe4   :  { %v1202_v52 = vpop.f32.mrf.mxu2  ;;  %v1334_v53 = vpop.f32.mrf.mxu3  ;;  %1490 = vst.msk [vmem:[%s3775_s3 + $0x1a8] sm:$0xff] %vm1436_vm2, %v1074_v49 }
  0xe5   :  { %v1203_v54 = vadd.f32 %v1202_v52, %v292_v50  ;;  %v1335_v55 = vadd.f32 %v1334_v53, %v336_v51  ;;  %v296_v50 = vld [vmem:[%s3774_s2 + $0x320] sm:$0xff] }
  0xe6   :  { %v340_v51 = vld [vmem:[%s3774_s2 + $0x480] sm:$0xff] }
  0xe7   :  { %1533 = vst.msk [vmem:[%s3775_s3 + $0x300] sm:$0xff] %vm1436_vm2, %v1203_v54 }
  0xe8   :  { %1577 = vst.msk [vmem:[%s3775_s3 + $0x460] sm:$0xff] %vm1436_vm2, %v1335_v55  ;;  %v947_v60 = vpop.f32.mrf.mxu0  ;;  %v1076_v61 = vpop.f32.mrf.mxu1 }
  0xe9   :  { %1729 = vmatmul.msk.f32.gmra.mxu2 %vm370_vm1, %v127_v56  ;;  %1773 = vmatmul.msk.f32.gmra.mxu3 %vm370_vm1, %v171_v57  ;;  %v948_v0 = vadd.f32 %v947_v60, %v207_v58  ;;  %v1077_v1 = vadd.f32 %v1076_v61, %v250_v59  ;;  %v131_v56 = vld [vmem:[%s3773_s1 + $0x3a8] sm:$0xff]  ;;  %v211_v58 = vld [vmem:[%s3774_s2 + $0x78] sm:$0xff]  ;;  %v254_v59 = vld [vmem:[%s3774_s2 + $0x1d0] sm:$0xff] }
  0xea   :  { %v175_v57 = vld [vmem:[%s3773_s1 + $0x508] sm:$0xff] }
  0xeb   :  { %1448 = vst.msk [vmem:[%s3775_s3 + $0x58] sm:$0xff] %vm1436_vm2, %v948_v0  ;;  %1643 = vmatmul.msk.f32.gmra.mxu0 %vm370_vm1, %v41_v62  ;;  %1686 = vmatmul.msk.f32.gmra.mxu1 %vm370_vm1, %v84_v63  ;;  %v45_v62 = vld [vmem:[%s3773_s1 + $0xf8] sm:$0xff]  ;;  %v88_v63 = vld [vmem:[%s3773_s1 + $0x250] sm:$0xff] }
  0xec   :  { %v1205_v4 = vpop.f32.mrf.mxu2  ;;  %v1337_v5 = vpop.f32.mrf.mxu3  ;;  %1491 = vst.msk [vmem:[%s3775_s3 + $0x1b0] sm:$0xff] %vm1436_vm2, %v1077_v1 }
  0xed   :  { %v1206_v6 = vadd.f32 %v1205_v4, %v293_v2  ;;  %v1338_v7 = vadd.f32 %v1337_v5, %v337_v3  ;;  %v297_v2 = vld [vmem:[%s3774_s2 + $0x328] sm:$0xff] }
  0xee   :  { %v341_v3 = vld [vmem:[%s3774_s2 + $0x488] sm:$0xff] }
  0xef   :  { %1534 = vst.msk [vmem:[%s3775_s3 + $0x308] sm:$0xff] %vm1436_vm2, %v1206_v6 }
  0xf0   :  { %1578 = vst.msk [vmem:[%s3775_s3 + $0x468] sm:$0xff] %vm1436_vm2, %v1338_v7  ;;  %v950_v12 = vpop.f32.mrf.mxu0  ;;  %v1079_v13 = vpop.f32.mrf.mxu1 }
  0xf1   :  { %1730 = vmatmul.msk.f32.gmra.mxu2 %vm370_vm1, %v128_v8  ;;  %1774 = vmatmul.msk.f32.gmra.mxu3 %vm370_vm1, %v172_v9  ;;  %v951_v16 = vadd.f32 %v950_v12, %v208_v10  ;;  %v1080_v17 = vadd.f32 %v1079_v13, %v251_v11  ;;  %v132_v8 = vld [vmem:[%s3773_s1 + $0x3b0] sm:$0xff]  ;;  %v212_v10 = vld [vmem:[%s3774_s2 + $0x80] sm:$0xff]  ;;  %v255_v11 = vld [vmem:[%s3774_s2 + $0x1d8] sm:$0xff] }
  0xf2   :  { %v176_v9 = vld [vmem:[%s3773_s1 + $0x510] sm:$0xff] }
  0xf3   :  { %1449 = vst.msk [vmem:[%s3775_s3 + $0x60] sm:$0xff] %vm1436_vm2, %v951_v16  ;;  %1644 = vmatmul.msk.f32.gmra.mxu0 %vm370_vm1, %v42_v14  ;;  %1687 = vmatmul.msk.f32.gmra.mxu1 %vm370_vm1, %v85_v15  ;;  %v46_v14 = vld [vmem:[%s3773_s1 + $0x100] sm:$0xff]  ;;  %v89_v15 = vld [vmem:[%s3773_s1 + $0x258] sm:$0xff] }
  0xf4   :  { %v1208_v20 = vpop.f32.mrf.mxu2  ;;  %v1340_v21 = vpop.f32.mrf.mxu3  ;;  %1492 = vst.msk [vmem:[%s3775_s3 + $0x1b8] sm:$0xff] %vm1436_vm2, %v1080_v17 }
  0xf5   :  { %v1209_v22 = vadd.f32 %v1208_v20, %v294_v18  ;;  %v1341_v23 = vadd.f32 %v1340_v21, %v338_v19  ;;  %v298_v18 = vld [vmem:[%s3774_s2 + $0x330] sm:$0xff] }
  0xf6   :  { %v342_v19 = vld [vmem:[%s3774_s2 + $0x490] sm:$0xff] }
  0xf7   :  { %1535 = vst.msk [vmem:[%s3775_s3 + $0x310] sm:$0xff] %vm1436_vm2, %v1209_v22 }
  0xf8   :  { %1579 = vst.msk [vmem:[%s3775_s3 + $0x470] sm:$0xff] %vm1436_vm2, %v1341_v23  ;;  %v953_v28 = vpop.f32.mrf.mxu0  ;;  %v1082_v29 = vpop.f32.mrf.mxu1 }
  0xf9   :  { %1731 = vmatmul.msk.f32.gmra.mxu2 %vm370_vm1, %v129_v24  ;;  %1775 = vmatmul.msk.f32.gmra.mxu3 %vm370_vm1, %v173_v25  ;;  %v954_v32 = vadd.f32 %v953_v28, %v209_v26  ;;  %v1083_v33 = vadd.f32 %v1082_v29, %v252_v27  ;;  %v133_v24 = vld [vmem:[%s3773_s1 + $0x3b8] sm:$0xff]  ;;  %v213_v26 = vld [vmem:[%s3774_s2 + $0x88] sm:$0xff]  ;;  %v256_v27 = vld [vmem:[%s3774_s2 + $0x1e0] sm:$0xff] }
  0xfa   :  { %v177_v25 = vld [vmem:[%s3773_s1 + $0x518] sm:$0xff] }
  0xfb   :  { %1450 = vst.msk [vmem:[%s3775_s3 + $0x68] sm:$0xff] %vm1436_vm2, %v954_v32  ;;  %1645 = vmatmul.msk.f32.gmra.mxu0 %vm370_vm1, %v43_v30  ;;  %1688 = vmatmul.msk.f32.gmra.mxu1 %vm370_vm1, %v86_v31  ;;  %v47_v30 = vld [vmem:[%s3773_s1 + $0x108] sm:$0xff]  ;;  %v90_v31 = vld [vmem:[%s3773_s1 + $0x260] sm:$0xff] }
  0xfc   :  { %v1211_v36 = vpop.f32.mrf.mxu2  ;;  %v1343_v37 = vpop.f32.mrf.mxu3  ;;  %1493 = vst.msk [vmem:[%s3775_s3 + $0x1c0] sm:$0xff] %vm1436_vm2, %v1083_v33 }
  0xfd   :  { %v1212_v38 = vadd.f32 %v1211_v36, %v295_v34  ;;  %v1344_v39 = vadd.f32 %v1343_v37, %v339_v35  ;;  %v299_v34 = vld [vmem:[%s3774_s2 + $0x338] sm:$0xff] }
  0xfe   :  { %v343_v35 = vld [vmem:[%s3774_s2 + $0x498] sm:$0xff] }
  0xff   :  { %1536 = vst.msk [vmem:[%s3775_s3 + $0x318] sm:$0xff] %vm1436_vm2, %v1212_v38 }
 0x100   :  { %1580 = vst.msk [vmem:[%s3775_s3 + $0x478] sm:$0xff] %vm1436_vm2, %v1344_v39  ;;  %v956_v44 = vpop.f32.mrf.mxu0  ;;  %v1085_v45 = vpop.f32.mrf.mxu1 }
 0x101   :  { %1732 = vmatmul.msk.f32.gmra.mxu2 %vm370_vm1, %v130_v40  ;;  %1776 = vmatmul.msk.f32.gmra.mxu3 %vm370_vm1, %v174_v41  ;;  %v957_v48 = vadd.f32 %v956_v44, %v210_v42  ;;  %v1086_v49 = vadd.f32 %v1085_v45, %v253_v43  ;;  %v134_v40 = vld [vmem:[%s3773_s1 + $0x3c0] sm:$0xff]  ;;  %v214_v42 = vld [vmem:[%s3774_s2 + $0x90] sm:$0xff]  ;;  %v257_v43 = vld [vmem:[%s3774_s2 + $0x1e8] sm:$0xff] }
 0x102   :  { %v178_v41 = vld [vmem:[%s3773_s1 + $0x520] sm:$0xff] }
 0x103   :  { %1451 = vst.msk [vmem:[%s3775_s3 + $0x70] sm:$0xff] %vm1436_vm2, %v957_v48  ;;  %1646 = vmatmul.msk.f32.gmra.mxu0 %vm370_vm1, %v44_v46  ;;  %1689 = vmatmul.msk.f32.gmra.mxu1 %vm370_vm1, %v87_v47  ;;  %v48_v46 = vld [vmem:[%s3773_s1 + $0x110] sm:$0xff]  ;;  %v91_v47 = vld [vmem:[%s3773_s1 + $0x268] sm:$0xff] }
 0x104   :  { %v1214_v52 = vpop.f32.mrf.mxu2  ;;  %v1346_v53 = vpop.f32.mrf.mxu3  ;;  %1494 = vst.msk [vmem:[%s3775_s3 + $0x1c8] sm:$0xff] %vm1436_vm2, %v1086_v49 }
 0x105   :  { %v1215_v54 = vadd.f32 %v1214_v52, %v296_v50  ;;  %v1347_v55 = vadd.f32 %v1346_v53, %v340_v51  ;;  %v300_v50 = vld [vmem:[%s3774_s2 + $0x340] sm:$0xff] }
 0x106   :  { %v344_v51 = vld [vmem:[%s3774_s2 + $0x4a0] sm:$0xff] }
 0x107   :  { %1537 = vst.msk [vmem:[%s3775_s3 + $0x320] sm:$0xff] %vm1436_vm2, %v1215_v54 }
 0x108   :  { %1581 = vst.msk [vmem:[%s3775_s3 + $0x480] sm:$0xff] %vm1436_vm2, %v1347_v55  ;;  %v959_v60 = vpop.f32.mrf.mxu0  ;;  %v1088_v61 = vpop.f32.mrf.mxu1 }
 0x109   :  { %1733 = vmatmul.msk.f32.gmra.mxu2 %vm370_vm1, %v131_v56  ;;  %1777 = vmatmul.msk.f32.gmra.mxu3 %vm370_vm1, %v175_v57  ;;  %v960_v0 = vadd.f32 %v959_v60, %v211_v58  ;;  %v1089_v1 = vadd.f32 %v1088_v61, %v254_v59  ;;  %v135_v56 = vld [vmem:[%s3773_s1 + $0x3c8] sm:$0xff]  ;;  %v215_v58 = vld [vmem:[%s3774_s2 + $0x98] sm:$0xff]  ;;  %v258_v59 = vld [vmem:[%s3774_s2 + $0x1f0] sm:$0xff] }
 0x10a   :  { %v179_v57 = vld [vmem:[%s3773_s1 + $0x528] sm:$0xff] }
 0x10b   :  { %1452 = vst.msk [vmem:[%s3775_s3 + $0x78] sm:$0xff] %vm1436_vm2, %v960_v0  ;;  %1647 = vmatmul.msk.f32.gmra.mxu0 %vm370_vm1, %v45_v62  ;;  %1690 = vmatmul.msk.f32.gmra.mxu1 %vm370_vm1, %v88_v63  ;;  %v49_v62 = vld [vmem:[%s3773_s1 + $0x118] sm:$0xff]  ;;  %v92_v63 = vld [vmem:[%s3773_s1 + $0x270] sm:$0xff] }
 0x10c   :  { %v1217_v4 = vpop.f32.mrf.mxu2  ;;  %v1349_v5 = vpop.f32.mrf.mxu3  ;;  %1495 = vst.msk [vmem:[%s3775_s3 + $0x1d0] sm:$0xff] %vm1436_vm2, %v1089_v1 }
 0x10d   :  { %v1218_v6 = vadd.f32 %v1217_v4, %v297_v2  ;;  %v1350_v7 = vadd.f32 %v1349_v5, %v341_v3  ;;  %v301_v2 = vld [vmem:[%s3774_s2 + $0x348] sm:$0xff] }
 0x10e   :  { %v345_v3 = vld [vmem:[%s3774_s2 + $0x4a8] sm:$0xff] }
 0x10f   :  { %1538 = vst.msk [vmem:[%s3775_s3 + $0x328] sm:$0xff] %vm1436_vm2, %v1218_v6 }
 0x110   :  { %1582 = vst.msk [vmem:[%s3775_s3 + $0x488] sm:$0xff] %vm1436_vm2, %v1350_v7  ;;  %v962_v12 = vpop.f32.mrf.mxu0  ;;  %v1091_v13 = vpop.f32.mrf.mxu1 }
 0x111   :  { %1734 = vmatmul.msk.f32.gmra.mxu2 %vm370_vm1, %v132_v8  ;;  %1778 = vmatmul.msk.f32.gmra.mxu3 %vm370_vm1, %v176_v9  ;;  %v963_v16 = vadd.f32 %v962_v12, %v212_v10  ;;  %v1092_v17 = vadd.f32 %v1091_v13, %v255_v11  ;;  %v136_v8 = vld [vmem:[%s3773_s1 + $0x3d0] sm:$0xff]  ;;  %v216_v10 = vld [vmem:[%s3774_s2 + $0xa0] sm:$0xff]  ;;  %v259_v11 = vld [vmem:[%s3774_s2 + $0x1f8] sm:$0xff] }
 0x112   :  { %v180_v9 = vld [vmem:[%s3773_s1 + $0x530] sm:$0xff] }
 0x113   :  { %1453 = vst.msk [vmem:[%s3775_s3 + $0x80] sm:$0xff] %vm1436_vm2, %v963_v16  ;;  %1648 = vmatmul.msk.f32.gmra.mxu0 %vm370_vm1, %v46_v14  ;;  %1691 = vmatmul.msk.f32.gmra.mxu1 %vm370_vm1, %v89_v15  ;;  %v50_v14 = vld [vmem:[%s3773_s1 + $0x120] sm:$0xff]  ;;  %v93_v15 = vld [vmem:[%s3773_s1 + $0x278] sm:$0xff] }
 0x114   :  { %v1220_v20 = vpop.f32.mrf.mxu2  ;;  %v1352_v21 = vpop.f32.mrf.mxu3  ;;  %1496 = vst.msk [vmem:[%s3775_s3 + $0x1d8] sm:$0xff] %vm1436_vm2, %v1092_v17 }
 0x115   :  { %v1221_v22 = vadd.f32 %v1220_v20, %v298_v18  ;;  %v1353_v23 = vadd.f32 %v1352_v21, %v342_v19  ;;  %v302_v18 = vld [vmem:[%s3774_s2 + $0x350] sm:$0xff] }
 0x116   :  { %v346_v19 = vld [vmem:[%s3774_s2 + $0x4b0] sm:$0xff] }
 0x117   :  { %1539 = vst.msk [vmem:[%s3775_s3 + $0x330] sm:$0xff] %vm1436_vm2, %v1221_v22 }
 0x118   :  { %1583 = vst.msk [vmem:[%s3775_s3 + $0x490] sm:$0xff] %vm1436_vm2, %v1353_v23  ;;  %v965_v28 = vpop.f32.mrf.mxu0  ;;  %v1094_v29 = vpop.f32.mrf.mxu1 }
 0x119   :  { %1735 = vmatmul.msk.f32.gmra.mxu2 %vm370_vm1, %v133_v24  ;;  %1779 = vmatmul.msk.f32.gmra.mxu3 %vm370_vm1, %v177_v25  ;;  %v966_v32 = vadd.f32 %v965_v28, %v213_v26  ;;  %v1095_v33 = vadd.f32 %v1094_v29, %v256_v27  ;;  %v137_v24 = vld [vmem:[%s3773_s1 + $0x3d8] sm:$0xff]  ;;  %v217_v26 = vld [vmem:[%s3774_s2 + $0xa8] sm:$0xff]  ;;  %v260_v27 = vld [vmem:[%s3774_s2 + $0x200] sm:$0xff] }
 0x11a   :  { %v181_v25 = vld [vmem:[%s3773_s1 + $0x538] sm:$0xff] }
 0x11b   :  { %1454 = vst.msk [vmem:[%s3775_s3 + $0x88] sm:$0xff] %vm1436_vm2, %v966_v32  ;;  %1649 = vmatmul.msk.f32.gmra.mxu0 %vm370_vm1, %v47_v30  ;;  %1692 = vmatmul.msk.f32.gmra.mxu1 %vm370_vm1, %v90_v31  ;;  %v51_v30 = vld [vmem:[%s3773_s1 + $0x128] sm:$0xff]  ;;  %v94_v31 = vld [vmem:[%s3773_s1 + $0x280] sm:$0xff] }
 0x11c   :  { %v1223_v36 = vpop.f32.mrf.mxu2  ;;  %v1355_v37 = vpop.f32.mrf.mxu3  ;;  %1497 = vst.msk [vmem:[%s3775_s3 + $0x1e0] sm:$0xff] %vm1436_vm2, %v1095_v33 }
 0x11d   :  { %v1224_v38 = vadd.f32 %v1223_v36, %v299_v34  ;;  %v1356_v39 = vadd.f32 %v1355_v37, %v343_v35  ;;  %v303_v34 = vld [vmem:[%s3774_s2 + $0x358] sm:$0xff] }
 0x11e   :  { %v347_v35 = vld [vmem:[%s3774_s2 + $0x4b8] sm:$0xff] }
 0x11f   :  { %1540 = vst.msk [vmem:[%s3775_s3 + $0x338] sm:$0xff] %vm1436_vm2, %v1224_v38 }
 0x120   :  { %1584 = vst.msk [vmem:[%s3775_s3 + $0x498] sm:$0xff] %vm1436_vm2, %v1356_v39  ;;  %v968_v44 = vpop.f32.mrf.mxu0  ;;  %v1097_v45 = vpop.f32.mrf.mxu1 }
 0x121   :  { %1736 = vmatmul.msk.f32.gmra.mxu2 %vm370_vm1, %v134_v40  ;;  %1780 = vmatmul.msk.f32.gmra.mxu3 %vm370_vm1, %v178_v41  ;;  %v969_v48 = vadd.f32 %v968_v44, %v214_v42  ;;  %v1098_v49 = vadd.f32 %v1097_v45, %v257_v43  ;;  %v138_v40 = vld [vmem:[%s3773_s1 + $0x3e0] sm:$0xff]  ;;  %v218_v42 = vld [vmem:[%s3774_s2 + $0xb0] sm:$0xff]  ;;  %v261_v43 = vld [vmem:[%s3774_s2 + $0x208] sm:$0xff] }
 0x122   :  { %v182_v41 = vld [vmem:[%s3773_s1 + $0x540] sm:$0xff] }
 0x123   :  { %1455 = vst.msk [vmem:[%s3775_s3 + $0x90] sm:$0xff] %vm1436_vm2, %v969_v48  ;;  %1650 = vmatmul.msk.f32.gmra.mxu0 %vm370_vm1, %v48_v46  ;;  %1693 = vmatmul.msk.f32.gmra.mxu1 %vm370_vm1, %v91_v47  ;;  %v52_v46 = vld [vmem:[%s3773_s1 + $0x130] sm:$0xff]  ;;  %v95_v47 = vld [vmem:[%s3773_s1 + $0x288] sm:$0xff] }
 0x124   :  { %v1226_v52 = vpop.f32.mrf.mxu2  ;;  %v1358_v53 = vpop.f32.mrf.mxu3  ;;  %1498 = vst.msk [vmem:[%s3775_s3 + $0x1e8] sm:$0xff] %vm1436_vm2, %v1098_v49 }
 0x125   :  { %v1227_v54 = vadd.f32 %v1226_v52, %v300_v50  ;;  %v1359_v55 = vadd.f32 %v1358_v53, %v344_v51  ;;  %v304_v50 = vld [vmem:[%s3774_s2 + $0x360] sm:$0xff] }
 0x126   :  { %v348_v51 = vld [vmem:[%s3774_s2 + $0x4c0] sm:$0xff] }
 0x127   :  { %1541 = vst.msk [vmem:[%s3775_s3 + $0x340] sm:$0xff] %vm1436_vm2, %v1227_v54 }
 0x128   :  { %1585 = vst.msk [vmem:[%s3775_s3 + $0x4a0] sm:$0xff] %vm1436_vm2, %v1359_v55  ;;  %v971_v60 = vpop.f32.mrf.mxu0  ;;  %v1100_v61 = vpop.f32.mrf.mxu1 }
 0x129   :  { %1737 = vmatmul.msk.f32.gmra.mxu2 %vm370_vm1, %v135_v56  ;;  %1781 = vmatmul.msk.f32.gmra.mxu3 %vm370_vm1, %v179_v57  ;;  %v972_v0 = vadd.f32 %v971_v60, %v215_v58  ;;  %v1101_v1 = vadd.f32 %v1100_v61, %v258_v59  ;;  %v139_v56 = vld [vmem:[%s3773_s1 + $0x3e8] sm:$0xff]  ;;  %v219_v58 = vld [vmem:[%s3774_s2 + $0xb8] sm:$0xff]  ;;  %v262_v59 = vld [vmem:[%s3774_s2 + $0x210] sm:$0xff] }
 0x12a   :  { %v183_v57 = vld [vmem:[%s3773_s1 + $0x548] sm:$0xff] }
 0x12b   :  { %1456 = vst.msk [vmem:[%s3775_s3 + $0x98] sm:$0xff] %vm1436_vm2, %v972_v0  ;;  %1651 = vmatmul.msk.f32.gmra.mxu0 %vm370_vm1, %v49_v62  ;;  %1694 = vmatmul.msk.f32.gmra.mxu1 %vm370_vm1, %v92_v63  ;;  %v53_v62 = vld [vmem:[%s3773_s1 + $0x138] sm:$0xff]  ;;  %v96_v63 = vld [vmem:[%s3773_s1 + $0x290] sm:$0xff] }
 0x12c   :  { %v1229_v4 = vpop.f32.mrf.mxu2  ;;  %v1361_v5 = vpop.f32.mrf.mxu3  ;;  %1499 = vst.msk [vmem:[%s3775_s3 + $0x1f0] sm:$0xff] %vm1436_vm2, %v1101_v1 }
 0x12d   :  { %v1230_v6 = vadd.f32 %v1229_v4, %v301_v2  ;;  %v1362_v7 = vadd.f32 %v1361_v5, %v345_v3  ;;  %v305_v2 = vld [vmem:[%s3774_s2 + $0x368] sm:$0xff] }
 0x12e   :  { %v349_v3 = vld [vmem:[%s3774_s2 + $0x4c8] sm:$0xff] }
 0x12f   :  { %1542 = vst.msk [vmem:[%s3775_s3 + $0x348] sm:$0xff] %vm1436_vm2, %v1230_v6 }
 0x130   :  { %1586 = vst.msk [vmem:[%s3775_s3 + $0x4a8] sm:$0xff] %vm1436_vm2, %v1362_v7  ;;  %v974_v12 = vpop.f32.mrf.mxu0  ;;  %v1103_v13 = vpop.f32.mrf.mxu1 }
 0x131   :  { %1738 = vmatmul.msk.f32.gmra.mxu2 %vm370_vm1, %v136_v8  ;;  %1782 = vmatmul.msk.f32.gmra.mxu3 %vm370_vm1, %v180_v9  ;;  %v975_v16 = vadd.f32 %v974_v12, %v216_v10  ;;  %v1104_v17 = vadd.f32 %v1103_v13, %v259_v11  ;;  %v140_v8 = vld [vmem:[%s3773_s1 + $0x3f0] sm:$0xff]  ;;  %v220_v10 = vld [vmem:[%s3774_s2 + $0xc0] sm:$0xff]  ;;  %v263_v11 = vld [vmem:[%s3774_s2 + $0x218] sm:$0xff] }
 0x132   :  { %v184_v9 = vld [vmem:[%s3773_s1 + $0x550] sm:$0xff] }
 0x133   :  { %1457 = vst.msk [vmem:[%s3775_s3 + $0xa0] sm:$0xff] %vm1436_vm2, %v975_v16  ;;  %1652 = vmatmul.msk.f32.gmra.mxu0 %vm370_vm1, %v50_v14  ;;  %1695 = vmatmul.msk.f32.gmra.mxu1 %vm370_vm1, %v93_v15  ;;  %v54_v14 = vld [vmem:[%s3773_s1 + $0x140] sm:$0xff]  ;;  %v97_v15 = vld [vmem:[%s3773_s1 + $0x298] sm:$0xff] }
 0x134   :  { %v1232_v20 = vpop.f32.mrf.mxu2  ;;  %v1364_v21 = vpop.f32.mrf.mxu3  ;;  %1500 = vst.msk [vmem:[%s3775_s3 + $0x1f8] sm:$0xff] %vm1436_vm2, %v1104_v17 }
 0x135   :  { %v1233_v22 = vadd.f32 %v1232_v20, %v302_v18  ;;  %v1365_v23 = vadd.f32 %v1364_v21, %v346_v19  ;;  %v306_v18 = vld [vmem:[%s3774_s2 + $0x370] sm:$0xff] }
 0x136   :  { %v350_v19 = vld [vmem:[%s3774_s2 + $0x4d0] sm:$0xff] }
 0x137   :  { %1543 = vst.msk [vmem:[%s3775_s3 + $0x350] sm:$0xff] %vm1436_vm2, %v1233_v22 }
 0x138   :  { %1587 = vst.msk [vmem:[%s3775_s3 + $0x4b0] sm:$0xff] %vm1436_vm2, %v1365_v23  ;;  %v977_v28 = vpop.f32.mrf.mxu0  ;;  %v1106_v29 = vpop.f32.mrf.mxu1 }
 0x139   :  { %1739 = vmatmul.msk.f32.gmra.mxu2 %vm370_vm1, %v137_v24  ;;  %1783 = vmatmul.msk.f32.gmra.mxu3 %vm370_vm1, %v181_v25  ;;  %v978_v32 = vadd.f32 %v977_v28, %v217_v26  ;;  %v1107_v33 = vadd.f32 %v1106_v29, %v260_v27  ;;  %v141_v24 = vld [vmem:[%s3773_s1 + $0x3f8] sm:$0xff]  ;;  %v221_v26 = vld [vmem:[%s3774_s2 + $0xc8] sm:$0xff]  ;;  %v264_v27 = vld [vmem:[%s3774_s2 + $0x220] sm:$0xff] }
 0x13a   :  { %v185_v25 = vld [vmem:[%s3773_s1 + $0x558] sm:$0xff] }
 0x13b   :  { %1458 = vst.msk [vmem:[%s3775_s3 + $0xa8] sm:$0xff] %vm1436_vm2, %v978_v32  ;;  %1653 = vmatmul.msk.f32.gmra.mxu0 %vm370_vm1, %v51_v30  ;;  %1696 = vmatmul.msk.f32.gmra.mxu1 %vm370_vm1, %v94_v31  ;;  %v55_v30 = vld [vmem:[%s3773_s1 + $0x148] sm:$0xff]  ;;  %v98_v31 = vld [vmem:[%s3773_s1 + $0x2a0] sm:$0xff] }
 0x13c   :  { %v1235_v36 = vpop.f32.mrf.mxu2  ;;  %v1367_v37 = vpop.f32.mrf.mxu3  ;;  %1501 = vst.msk [vmem:[%s3775_s3 + $0x200] sm:$0xff] %vm1436_vm2, %v1107_v33 }
 0x13d   :  { %v1236_v38 = vadd.f32 %v1235_v36, %v303_v34  ;;  %v1368_v39 = vadd.f32 %v1367_v37, %v347_v35  ;;  %v307_v34 = vld [vmem:[%s3774_s2 + $0x378] sm:$0xff] }
 0x13e   :  { %v351_v35 = vld [vmem:[%s3774_s2 + $0x4d8] sm:$0xff] }
 0x13f   :  { %1544 = vst.msk [vmem:[%s3775_s3 + $0x358] sm:$0xff] %vm1436_vm2, %v1236_v38 }
 0x140   :  { %1588 = vst.msk [vmem:[%s3775_s3 + $0x4b8] sm:$0xff] %vm1436_vm2, %v1368_v39  ;;  %v980_v44 = vpop.f32.mrf.mxu0  ;;  %v1109_v45 = vpop.f32.mrf.mxu1 }
 0x141   :  { %1740 = vmatmul.msk.f32.gmra.mxu2 %vm370_vm1, %v138_v40  ;;  %1784 = vmatmul.msk.f32.gmra.mxu3 %vm370_vm1, %v182_v41  ;;  %v981_v48 = vadd.f32 %v980_v44, %v218_v42  ;;  %v1110_v49 = vadd.f32 %v1109_v45, %v261_v43  ;;  %v142_v40 = vld [vmem:[%s3773_s1 + $0x400] sm:$0xff]  ;;  %v222_v42 = vld [vmem:[%s3774_s2 + $0xd0] sm:$0xff]  ;;  %v265_v43 = vld [vmem:[%s3774_s2 + $0x228] sm:$0xff] }
 0x142   :  { %v186_v41 = vld [vmem:[%s3773_s1 + $0x560] sm:$0xff] }
 0x143   :  { %1459 = vst.msk [vmem:[%s3775_s3 + $0xb0] sm:$0xff] %vm1436_vm2, %v981_v48  ;;  %1654 = vmatmul.msk.f32.gmra.mxu0 %vm370_vm1, %v52_v46  ;;  %1697 = vmatmul.msk.f32.gmra.mxu1 %vm370_vm1, %v95_v47  ;;  %v56_v46 = vld [vmem:[%s3773_s1 + $0x150] sm:$0xff]  ;;  %v99_v47 = vld [vmem:[%s3773_s1 + $0x2a8] sm:$0xff] }
 0x144   :  { %v1238_v52 = vpop.f32.mrf.mxu2  ;;  %v1370_v53 = vpop.f32.mrf.mxu3  ;;  %1502 = vst.msk [vmem:[%s3775_s3 + $0x208] sm:$0xff] %vm1436_vm2, %v1110_v49 }
 0x145   :  { %v1239_v54 = vadd.f32 %v1238_v52, %v304_v50  ;;  %v1371_v55 = vadd.f32 %v1370_v53, %v348_v51  ;;  %v308_v50 = vld [vmem:[%s3774_s2 + $0x380] sm:$0xff] }
 0x146   :  { %v352_v51 = vld [vmem:[%s3774_s2 + $0x4e0] sm:$0xff] }
 0x147   :  { %1545 = vst.msk [vmem:[%s3775_s3 + $0x360] sm:$0xff] %vm1436_vm2, %v1239_v54 }
 0x148   :  { %1589 = vst.msk [vmem:[%s3775_s3 + $0x4c0] sm:$0xff] %vm1436_vm2, %v1371_v55  ;;  %v983_v60 = vpop.f32.mrf.mxu0  ;;  %v1112_v61 = vpop.f32.mrf.mxu1 }
 0x149   :  { %1741 = vmatmul.msk.f32.gmra.mxu2 %vm370_vm1, %v139_v56  ;;  %1785 = vmatmul.msk.f32.gmra.mxu3 %vm370_vm1, %v183_v57  ;;  %v984_v0 = vadd.f32 %v983_v60, %v219_v58  ;;  %v1113_v1 = vadd.f32 %v1112_v61, %v262_v59  ;;  %v143_v56 = vld [vmem:[%s3773_s1 + $0x408] sm:$0xff]  ;;  %v223_v58 = vld [vmem:[%s3774_s2 + $0xd8] sm:$0xff]  ;;  %v266_v59 = vld [vmem:[%s3774_s2 + $0x230] sm:$0xff] }
 0x14a   :  { %v187_v57 = vld [vmem:[%s3773_s1 + $0x568] sm:$0xff] }
 0x14b   :  { %1460 = vst.msk [vmem:[%s3775_s3 + $0xb8] sm:$0xff] %vm1436_vm2, %v984_v0  ;;  %1655 = vmatmul.msk.f32.gmra.mxu0 %vm370_vm1, %v53_v62  ;;  %1698 = vmatmul.msk.f32.gmra.mxu1 %vm370_vm1, %v96_v63  ;;  %v309_v0 = vld [vmem:[%s3774_s2 + $0x388] sm:$0xff] }
 0x14c   :  { %v1241_v4 = vpop.f32.mrf.mxu2  ;;  %v1373_v5 = vpop.f32.mrf.mxu3  ;;  %1503 = vst.msk [vmem:[%s3775_s3 + $0x210] sm:$0xff] %vm1436_vm2, %v1113_v1  ;;  %v353_v1 = vld [vmem:[%s3774_s2 + $0x4e8] sm:$0xff] }
 0x14d   :  { %v1242_v6 = vadd.f32 %v1241_v4, %v305_v2  ;;  %v1374_v7 = vadd.f32 %v1373_v5, %v349_v3 }
 0x14f   :  { %1546 = vst.msk [vmem:[%s3775_s3 + $0x368] sm:$0xff] %vm1436_vm2, %v1242_v6  ;;  %v224_v6 = vld [vmem:[%s3774_s2 + $0xe0] sm:$0xff] }
 0x150   :  { %1590 = vst.msk [vmem:[%s3775_s3 + $0x4c8] sm:$0xff] %vm1436_vm2, %v1374_v7  ;;  %v986_v12 = vpop.f32.mrf.mxu0  ;;  %v1115_v13 = vpop.f32.mrf.mxu1  ;;  %v267_v7 = vld [vmem:[%s3774_s2 + $0x238] sm:$0xff] }
 0x151   :  { %1742 = vmatmul.msk.f32.gmra.mxu2 %vm370_vm1, %v140_v8  ;;  %1786 = vmatmul.msk.f32.gmra.mxu3 %vm370_vm1, %v184_v9  ;;  %v987_v16 = vadd.f32 %v986_v12, %v220_v10  ;;  %v1116_v17 = vadd.f32 %v1115_v13, %v263_v11  ;;  %v310_v12 = vld [vmem:[%s3774_s2 + $0x390] sm:$0xff] }
 0x152   :  { %v354_v13 = vld [vmem:[%s3774_s2 + $0x4f0] sm:$0xff] }
 0x153   :  { %1461 = vst.msk [vmem:[%s3775_s3 + $0xc0] sm:$0xff] %vm1436_vm2, %v987_v16  ;;  %1656 = vmatmul.msk.f32.gmra.mxu0 %vm370_vm1, %v54_v14  ;;  %1699 = vmatmul.msk.f32.gmra.mxu1 %vm370_vm1, %v97_v15 }
 0x154   :  { %v1244_v20 = vpop.f32.mrf.mxu2  ;;  %v1376_v21 = vpop.f32.mrf.mxu3  ;;  %1504 = vst.msk [vmem:[%s3775_s3 + $0x218] sm:$0xff] %vm1436_vm2, %v1116_v17 }
 0x155   :  { %v1245_v22 = vadd.f32 %v1244_v20, %v306_v18  ;;  %v1377_v23 = vadd.f32 %v1376_v21, %v350_v19  ;;  %v225_v18 = vld [vmem:[%s3774_s2 + $0xe8] sm:$0xff]  ;;  %v268_v19 = vld [vmem:[%s3774_s2 + $0x240] sm:$0xff] }
 0x157   :  { %1547 = vst.msk [vmem:[%s3775_s3 + $0x370] sm:$0xff] %vm1436_vm2, %v1245_v22 }
 0x158   :  { %1591 = vst.msk [vmem:[%s3775_s3 + $0x4d0] sm:$0xff] %vm1436_vm2, %v1377_v23  ;;  %v989_v28 = vpop.f32.mrf.mxu0  ;;  %v1118_v29 = vpop.f32.mrf.mxu1 }
 0x159   :  { %1743 = vmatmul.msk.f32.gmra.mxu2 %vm370_vm1, %v141_v24  ;;  %1787 = vmatmul.msk.f32.gmra.mxu3 %vm370_vm1, %v185_v25  ;;  %v990_v32 = vadd.f32 %v989_v28, %v221_v26  ;;  %v1119_v33 = vadd.f32 %v1118_v29, %v264_v27  ;;  %v311_v24 = vld [vmem:[%s3774_s2 + $0x398] sm:$0xff] }
 0x15a   :  { %v355_v25 = vld [vmem:[%s3774_s2 + $0x4f8] sm:$0xff] }
 0x15b   :  { %1462 = vst.msk [vmem:[%s3775_s3 + $0xc8] sm:$0xff] %vm1436_vm2, %v990_v32  ;;  %1657 = vmatmul.msk.f32.gmra.mxu0 %vm370_vm1, %v55_v30  ;;  %1700 = vmatmul.msk.f32.gmra.mxu1 %vm370_vm1, %v98_v31  ;;  %v226_v30 = vld [vmem:[%s3774_s2 + $0xf0] sm:$0xff]  ;;  %v269_v31 = vld [vmem:[%s3774_s2 + $0x248] sm:$0xff] }
 0x15c   :  { %v1247_v36 = vpop.f32.mrf.mxu2  ;;  %v1379_v37 = vpop.f32.mrf.mxu3  ;;  %1505 = vst.msk [vmem:[%s3775_s3 + $0x220] sm:$0xff] %vm1436_vm2, %v1119_v33 }
 0x15d   :  { %v1248_v38 = vadd.f32 %v1247_v36, %v307_v34  ;;  %v1380_v39 = vadd.f32 %v1379_v37, %v351_v35  ;;  %v312_v36 = vld [vmem:[%s3774_s2 + $0x3a0] sm:$0xff] }
 0x15e   :  { %v356_v37 = vld [vmem:[%s3774_s2 + $0x500] sm:$0xff] }
 0x15f   :  { %1548 = vst.msk [vmem:[%s3775_s3 + $0x378] sm:$0xff] %vm1436_vm2, %v1248_v38 }
 0x160   :  { %1592 = vst.msk [vmem:[%s3775_s3 + $0x4d8] sm:$0xff] %vm1436_vm2, %v1380_v39  ;;  %v992_v44 = vpop.f32.mrf.mxu0  ;;  %v1121_v45 = vpop.f32.mrf.mxu1 }
 0x161   :  { %1744 = vmatmul.msk.f32.gmra.mxu2 %vm370_vm1, %v142_v40  ;;  %1788 = vmatmul.msk.f32.gmra.mxu3 %vm370_vm1, %v186_v41  ;;  %v993_v48 = vadd.f32 %v992_v44, %v222_v42  ;;  %v1122_v49 = vadd.f32 %v1121_v45, %v265_v43  ;;  %v227_v42 = vld [vmem:[%s3774_s2 + $0xf8] sm:$0xff]  ;;  %v270_v43 = vld [vmem:[%s3774_s2 + $0x250] sm:$0xff] }
 0x163   :  { %1463 = vst.msk [vmem:[%s3775_s3 + $0xd0] sm:$0xff] %vm1436_vm2, %v993_v48  ;;  %1658 = vmatmul.msk.f32.gmra.mxu0 %vm370_vm1, %v56_v46  ;;  %1701 = vmatmul.msk.f32.gmra.mxu1 %vm370_vm1, %v99_v47  ;;  %v313_v48 = vld [vmem:[%s3774_s2 + $0x3a8] sm:$0xff] }
 0x164   :  { %v1250_v52 = vpop.f32.mrf.mxu2  ;;  %v1382_v53 = vpop.f32.mrf.mxu3  ;;  %1506 = vst.msk [vmem:[%s3775_s3 + $0x228] sm:$0xff] %vm1436_vm2, %v1122_v49  ;;  %v357_v49 = vld [vmem:[%s3774_s2 + $0x508] sm:$0xff] }
 0x165   :  { %v1251_v54 = vadd.f32 %v1250_v52, %v308_v50  ;;  %v1383_v55 = vadd.f32 %v1382_v53, %v352_v51 }
 0x167   :  { %1549 = vst.msk [vmem:[%s3775_s3 + $0x380] sm:$0xff] %vm1436_vm2, %v1251_v54  ;;  %v228_v54 = vld [vmem:[%s3774_s2 + $0x100] sm:$0xff] }
 0x168   :  { %1593 = vst.msk [vmem:[%s3775_s3 + $0x4e0] sm:$0xff] %vm1436_vm2, %v1383_v55  ;;  %v995_v60 = vpop.f32.mrf.mxu0  ;;  %v1124_v61 = vpop.f32.mrf.mxu1  ;;  %v271_v55 = vld [vmem:[%s3774_s2 + $0x258] sm:$0xff] }
 0x169   :  { %1745 = vmatmul.msk.f32.gmra.mxu2 %vm370_vm1, %v143_v56  ;;  %1789 = vmatmul.msk.f32.gmra.mxu3 %vm370_vm1, %v187_v57  ;;  %v996_v62 = vadd.f32 %v995_v60, %v223_v58  ;;  %v1125_v63 = vadd.f32 %v1124_v61, %v266_v59  ;;  %v314_v60 = vld [vmem:[%s3774_s2 + $0x3b0] sm:$0xff] }
 0x16a   :  { %v358_v61 = vld [vmem:[%s3774_s2 + $0x510] sm:$0xff] }
 0x16b   :  { %1464 = vst.msk [vmem:[%s3775_s3 + $0xd8] sm:$0xff] %vm1436_vm2, %v996_v62 }
 0x16c   :  { %v1253_v2 = vpop.f32.mrf.mxu2  ;;  %v1385_v3 = vpop.f32.mrf.mxu3  ;;  %1507 = vst.msk [vmem:[%s3775_s3 + $0x230] sm:$0xff] %vm1436_vm2, %v1125_v63 }
 0x16d   :  { %v1254_v4 = vadd.f32 %v1253_v2, %v309_v0  ;;  %v1386_v5 = vadd.f32 %v1385_v3, %v353_v1  ;;  %v229_v2 = vld [vmem:[%s3774_s2 + $0x108] sm:$0xff]  ;;  %v272_v3 = vld [vmem:[%s3774_s2 + $0x260] sm:$0xff] }
 0x16f   :  { %1550 = vst.msk [vmem:[%s3775_s3 + $0x388] sm:$0xff] %vm1436_vm2, %v1254_v4 }
 0x170   :  { %1594 = vst.msk [vmem:[%s3775_s3 + $0x4e8] sm:$0xff] %vm1436_vm2, %v1386_v5  ;;  %v998_v8 = vpop.f32.mrf.mxu0  ;;  %v1127_v9 = vpop.f32.mrf.mxu1 }
 0x171   :  { %v999_v10 = vadd.f32 %v998_v8, %v224_v6  ;;  %v1128_v11 = vadd.f32 %v1127_v9, %v267_v7  ;;  %v315_v8 = vld [vmem:[%s3774_s2 + $0x3b8] sm:$0xff] }
 0x172   :  { %v359_v9 = vld [vmem:[%s3774_s2 + $0x518] sm:$0xff] }
 0x173   :  { %1465 = vst.msk [vmem:[%s3775_s3 + $0xe0] sm:$0xff] %vm1436_vm2, %v999_v10 }
 0x174   :  { %v1256_v14 = vpop.f32.mrf.mxu2  ;;  %v1388_v15 = vpop.f32.mrf.mxu3  ;;  %1508 = vst.msk [vmem:[%s3775_s3 + $0x238] sm:$0xff] %vm1436_vm2, %v1128_v11 }
 0x175   :  { %v1257_v16 = vadd.f32 %v1256_v14, %v310_v12  ;;  %v1389_v17 = vadd.f32 %v1388_v15, %v354_v13  ;;  %v230_v14 = vld [vmem:[%s3774_s2 + $0x110] sm:$0xff]  ;;  %v273_v15 = vld [vmem:[%s3774_s2 + $0x268] sm:$0xff] }
 0x177   :  { %1551 = vst.msk [vmem:[%s3775_s3 + $0x390] sm:$0xff] %vm1436_vm2, %v1257_v16 }
 0x178   :  { %1595 = vst.msk [vmem:[%s3775_s3 + $0x4f0] sm:$0xff] %vm1436_vm2, %v1389_v17  ;;  %v1001_v20 = vpop.f32.mrf.mxu0  ;;  %v1130_v21 = vpop.f32.mrf.mxu1 }
 0x179   :  { %v1002_v22 = vadd.f32 %v1001_v20, %v225_v18  ;;  %v1131_v23 = vadd.f32 %v1130_v21, %v268_v19  ;;  %v316_v20 = vld [vmem:[%s3774_s2 + $0x3c0] sm:$0xff] }
 0x17a   :  { %v360_v21 = vld [vmem:[%s3774_s2 + $0x520] sm:$0xff] }
 0x17b   :  { %1466 = vst.msk [vmem:[%s3775_s3 + $0xe8] sm:$0xff] %vm1436_vm2, %v1002_v22 }
 0x17c   :  { %v1259_v26 = vpop.f32.mrf.mxu2  ;;  %v1391_v27 = vpop.f32.mrf.mxu3  ;;  %1509 = vst.msk [vmem:[%s3775_s3 + $0x240] sm:$0xff] %vm1436_vm2, %v1131_v23 }
 0x17d   :  { %v1260_v28 = vadd.f32 %v1259_v26, %v311_v24  ;;  %v1392_v29 = vadd.f32 %v1391_v27, %v355_v25  ;;  %v231_v26 = vld [vmem:[%s3774_s2 + $0x118] sm:$0xff]  ;;  %v274_v27 = vld [vmem:[%s3774_s2 + $0x270] sm:$0xff] }
 0x17f   :  { %1552 = vst.msk [vmem:[%s3775_s3 + $0x398] sm:$0xff] %vm1436_vm2, %v1260_v28 }
 0x180   :  { %1596 = vst.msk [vmem:[%s3775_s3 + $0x4f8] sm:$0xff] %vm1436_vm2, %v1392_v29  ;;  %v1004_v32 = vpop.f32.mrf.mxu0  ;;  %v1133_v33 = vpop.f32.mrf.mxu1 }
 0x181   :  { %v1005_v34 = vadd.f32 %v1004_v32, %v226_v30  ;;  %v1134_v35 = vadd.f32 %v1133_v33, %v269_v31  ;;  %v317_v32 = vld [vmem:[%s3774_s2 + $0x3c8] sm:$0xff] }
 0x182   :  { %v361_v33 = vld [vmem:[%s3774_s2 + $0x528] sm:$0xff] }
 0x183   :  { %1467 = vst.msk [vmem:[%s3775_s3 + $0xf0] sm:$0xff] %vm1436_vm2, %v1005_v34 }
 0x184   :  { %v1262_v38 = vpop.f32.mrf.mxu2  ;;  %v1394_v39 = vpop.f32.mrf.mxu3  ;;  %1510 = vst.msk [vmem:[%s3775_s3 + $0x248] sm:$0xff] %vm1436_vm2, %v1134_v35 }
 0x185   :  { %v1263_v40 = vadd.f32 %v1262_v38, %v312_v36  ;;  %v1395_v41 = vadd.f32 %v1394_v39, %v356_v37  ;;  %v232_v38 = vld [vmem:[%s3774_s2 + $0x120] sm:$0xff]  ;;  %v275_v39 = vld [vmem:[%s3774_s2 + $0x278] sm:$0xff] }
 0x187   :  { %1553 = vst.msk [vmem:[%s3775_s3 + $0x3a0] sm:$0xff] %vm1436_vm2, %v1263_v40 }
 0x188   :  { %1597 = vst.msk [vmem:[%s3775_s3 + $0x500] sm:$0xff] %vm1436_vm2, %v1395_v41  ;;  %v1007_v44 = vpop.f32.mrf.mxu0  ;;  %v1136_v45 = vpop.f32.mrf.mxu1 }
 0x189   :  { %v1008_v46 = vadd.f32 %v1007_v44, %v227_v42  ;;  %v1137_v47 = vadd.f32 %v1136_v45, %v270_v43  ;;  %v318_v44 = vld [vmem:[%s3774_s2 + $0x3d0] sm:$0xff] }
 0x18a   :  { %v362_v45 = vld [vmem:[%s3774_s2 + $0x530] sm:$0xff] }
 0x18b   :  { %1468 = vst.msk [vmem:[%s3775_s3 + $0xf8] sm:$0xff] %vm1436_vm2, %v1008_v46 }
 0x18c   :  { %v1265_v50 = vpop.f32.mrf.mxu2  ;;  %v1397_v51 = vpop.f32.mrf.mxu3  ;;  %1511 = vst.msk [vmem:[%s3775_s3 + $0x250] sm:$0xff] %vm1436_vm2, %v1137_v47 }
 0x18d   :  { %v1266_v52 = vadd.f32 %v1265_v50, %v313_v48  ;;  %v1398_v53 = vadd.f32 %v1397_v51, %v357_v49  ;;  %v233_v50 = vld [vmem:[%s3774_s2 + $0x128] sm:$0xff]  ;;  %v276_v51 = vld [vmem:[%s3774_s2 + $0x280] sm:$0xff] }
 0x18f   :  { %1554 = vst.msk [vmem:[%s3775_s3 + $0x3a8] sm:$0xff] %vm1436_vm2, %v1266_v52 }
 0x190   :  { %1598 = vst.msk [vmem:[%s3775_s3 + $0x508] sm:$0xff] %vm1436_vm2, %v1398_v53  ;;  %v1010_v56 = vpop.f32.mrf.mxu0  ;;  %v1139_v57 = vpop.f32.mrf.mxu1 }
 0x191   :  { %v1011_v58 = vadd.f32 %v1010_v56, %v228_v54  ;;  %v1140_v59 = vadd.f32 %v1139_v57, %v271_v55  ;;  %v319_v56 = vld [vmem:[%s3774_s2 + $0x3d8] sm:$0xff] }
 0x192   :  { %v363_v57 = vld [vmem:[%s3774_s2 + $0x538] sm:$0xff] }
 0x193   :  { %1469 = vst.msk [vmem:[%s3775_s3 + $0x100] sm:$0xff] %vm1436_vm2, %v1011_v58 }
 0x194   :  { %v1268_v62 = vpop.f32.mrf.mxu2  ;;  %v1400_v63 = vpop.f32.mrf.mxu3  ;;  %1512 = vst.msk [vmem:[%s3775_s3 + $0x258] sm:$0xff] %vm1436_vm2, %v1140_v59 }
 0x195   :  { %v1269_v0 = vadd.f32 %v1268_v62, %v314_v60  ;;  %v1401_v1 = vadd.f32 %v1400_v63, %v358_v61  ;;  %v234_v62 = vld [vmem:[%s3774_s2 + $0x130] sm:$0xff]  ;;  %v277_v63 = vld [vmem:[%s3774_s2 + $0x288] sm:$0xff] }
 0x197   :  { %1555 = vst.msk [vmem:[%s3775_s3 + $0x3b0] sm:$0xff] %vm1436_vm2, %v1269_v0 }
 0x198   :  { %1599 = vst.msk [vmem:[%s3775_s3 + $0x510] sm:$0xff] %vm1436_vm2, %v1401_v1  ;;  %v1013_v4 = vpop.f32.mrf.mxu0  ;;  %v1142_v5 = vpop.f32.mrf.mxu1 }
 0x199   :  { %v1014_v6 = vadd.f32 %v1013_v4, %v229_v2  ;;  %v1143_v7 = vadd.f32 %v1142_v5, %v272_v3  ;;  %v320_v4 = vld [vmem:[%s3774_s2 + $0x3e0] sm:$0xff] }
 0x19a   :  { %v364_v5 = vld [vmem:[%s3774_s2 + $0x540] sm:$0xff] }
 0x19b   :  { %1470 = vst.msk [vmem:[%s3775_s3 + $0x108] sm:$0xff] %vm1436_vm2, %v1014_v6 }
 0x19c   :  { %v1271_v10 = vpop.f32.mrf.mxu2  ;;  %v1403_v11 = vpop.f32.mrf.mxu3  ;;  %1513 = vst.msk [vmem:[%s3775_s3 + $0x260] sm:$0xff] %vm1436_vm2, %v1143_v7 }
 0x19d   :  { %v1272_v12 = vadd.f32 %v1271_v10, %v315_v8  ;;  %v1404_v13 = vadd.f32 %v1403_v11, %v359_v9  ;;  %v235_v10 = vld [vmem:[%s3774_s2 + $0x138] sm:$0xff]  ;;  %v278_v11 = vld [vmem:[%s3774_s2 + $0x290] sm:$0xff] }
 0x19f   :  { %1556 = vst.msk [vmem:[%s3775_s3 + $0x3b8] sm:$0xff] %vm1436_vm2, %v1272_v12 }
 0x1a0   :  { %1600 = vst.msk [vmem:[%s3775_s3 + $0x518] sm:$0xff] %vm1436_vm2, %v1404_v13  ;;  %v1016_v16 = vpop.f32.mrf.mxu0  ;;  %v1145_v17 = vpop.f32.mrf.mxu1 }
 0x1a1   :  { %v1017_v18 = vadd.f32 %v1016_v16, %v230_v14  ;;  %v1146_v19 = vadd.f32 %v1145_v17, %v273_v15  ;;  %v321_v16 = vld [vmem:[%s3774_s2 + $0x3e8] sm:$0xff] }
 0x1a2   :  { %v365_v17 = vld [vmem:[%s3774_s2 + $0x548] sm:$0xff] }
 0x1a3   :  { %1471 = vst.msk [vmem:[%s3775_s3 + $0x110] sm:$0xff] %vm1436_vm2, %v1017_v18 }
 0x1a4   :  { %v1274_v22 = vpop.f32.mrf.mxu2  ;;  %v1406_v23 = vpop.f32.mrf.mxu3  ;;  %1514 = vst.msk [vmem:[%s3775_s3 + $0x268] sm:$0xff] %vm1436_vm2, %v1146_v19 }
 0x1a5   :  { %v1275_v24 = vadd.f32 %v1274_v22, %v316_v20  ;;  %v1407_v25 = vadd.f32 %v1406_v23, %v360_v21  ;;  %v236_v22 = vld [vmem:[%s3774_s2 + $0x140] sm:$0xff]  ;;  %v279_v23 = vld [vmem:[%s3774_s2 + $0x298] sm:$0xff] }
 0x1a7   :  { %1557 = vst.msk [vmem:[%s3775_s3 + $0x3c0] sm:$0xff] %vm1436_vm2, %v1275_v24 }
 0x1a8   :  { %1601 = vst.msk [vmem:[%s3775_s3 + $0x520] sm:$0xff] %vm1436_vm2, %v1407_v25  ;;  %v1019_v28 = vpop.f32.mrf.mxu0  ;;  %v1148_v29 = vpop.f32.mrf.mxu1 }
 0x1a9   :  { %v1020_v30 = vadd.f32 %v1019_v28, %v231_v26  ;;  %v1149_v31 = vadd.f32 %v1148_v29, %v274_v27  ;;  %v322_v28 = vld [vmem:[%s3774_s2 + $0x3f0] sm:$0xff] }
 0x1aa   :  { %v366_v29 = vld [vmem:[%s3774_s2 + $0x550] sm:$0xff] }
 0x1ab   :  { %1472 = vst.msk [vmem:[%s3775_s3 + $0x118] sm:$0xff] %vm1436_vm2, %v1020_v30 }
 0x1ac   :  { %v1277_v34 = vpop.f32.mrf.mxu2  ;;  %v1409_v35 = vpop.f32.mrf.mxu3  ;;  %1515 = vst.msk [vmem:[%s3775_s3 + $0x270] sm:$0xff] %vm1436_vm2, %v1149_v31 }
 0x1ad   :  { %v1278_v36 = vadd.f32 %v1277_v34, %v317_v32  ;;  %v1410_v37 = vadd.f32 %v1409_v35, %v361_v33  ;;  %v237_v34 = vld [vmem:[%s3774_s2 + $0x148] sm:$0xff]  ;;  %v280_v35 = vld [vmem:[%s3774_s2 + $0x2a0] sm:$0xff] }
 0x1af   :  { %1558 = vst.msk [vmem:[%s3775_s3 + $0x3c8] sm:$0xff] %vm1436_vm2, %v1278_v36 }
 0x1b0   :  { %1602 = vst.msk [vmem:[%s3775_s3 + $0x528] sm:$0xff] %vm1436_vm2, %v1410_v37  ;;  %v1022_v40 = vpop.f32.mrf.mxu0  ;;  %v1151_v41 = vpop.f32.mrf.mxu1 }
 0x1b1   :  { %v1023_v42 = vadd.f32 %v1022_v40, %v232_v38  ;;  %v1152_v43 = vadd.f32 %v1151_v41, %v275_v39  ;;  %v323_v40 = vld [vmem:[%s3774_s2 + $0x3f8] sm:$0xff] }
 0x1b2   :  { %v367_v41 = vld [vmem:[%s3774_s2 + $0x558] sm:$0xff] }
 0x1b3   :  { %1473 = vst.msk [vmem:[%s3775_s3 + $0x120] sm:$0xff] %vm1436_vm2, %v1023_v42 }
 0x1b4   :  { %v1280_v46 = vpop.f32.mrf.mxu2  ;;  %v1412_v47 = vpop.f32.mrf.mxu3  ;;  %1516 = vst.msk [vmem:[%s3775_s3 + $0x278] sm:$0xff] %vm1436_vm2, %v1152_v43 }
 0x1b5   :  { %v1281_v48 = vadd.f32 %v1280_v46, %v318_v44  ;;  %v1413_v49 = vadd.f32 %v1412_v47, %v362_v45  ;;  %v238_v46 = vld [vmem:[%s3774_s2 + $0x150] sm:$0xff]  ;;  %v281_v47 = vld [vmem:[%s3774_s2 + $0x2a8] sm:$0xff] }
 0x1b7   :  { %1559 = vst.msk [vmem:[%s3775_s3 + $0x3d0] sm:$0xff] %vm1436_vm2, %v1281_v48 }
 0x1b8   :  { %1603 = vst.msk [vmem:[%s3775_s3 + $0x530] sm:$0xff] %vm1436_vm2, %v1413_v49  ;;  %v1025_v52 = vpop.f32.mrf.mxu0  ;;  %v1154_v53 = vpop.f32.mrf.mxu1 }
 0x1b9   :  { %v1026_v54 = vadd.f32 %v1025_v52, %v233_v50  ;;  %v1155_v55 = vadd.f32 %v1154_v53, %v276_v51  ;;  %v324_v52 = vld [vmem:[%s3774_s2 + $0x400] sm:$0xff] }
 0x1ba   :  { %v368_v53 = vld [vmem:[%s3774_s2 + $0x560] sm:$0xff] }
 0x1bb   :  { %1474 = vst.msk [vmem:[%s3775_s3 + $0x128] sm:$0xff] %vm1436_vm2, %v1026_v54 }
 0x1bc   :  { %v1283_v58 = vpop.f32.mrf.mxu2  ;;  %v1415_v59 = vpop.f32.mrf.mxu3  ;;  %1517 = vst.msk [vmem:[%s3775_s3 + $0x280] sm:$0xff] %vm1436_vm2, %v1155_v55 }
 0x1bd   :  { %v1284_v60 = vadd.f32 %v1283_v58, %v319_v56  ;;  %v1416_v61 = vadd.f32 %v1415_v59, %v363_v57  ;;  %v325_v58 = vld [vmem:[%s3774_s2 + $0x408] sm:$0xff] }
 0x1be   :  { %v369_v59 = vld [vmem:[%s3774_s2 + $0x568] sm:$0xff] }
 0x1bf   :  { %1560 = vst.msk [vmem:[%s3775_s3 + $0x3d8] sm:$0xff] %vm1436_vm2, %v1284_v60 }
 0x1c0   :  { %1604 = vst.msk [vmem:[%s3775_s3 + $0x538] sm:$0xff] %vm1436_vm2, %v1416_v61  ;;  %v1028_v0 = vpop.f32.mrf.mxu0  ;;  %v1157_v1 = vpop.f32.mrf.mxu1 }
 0x1c1   :  { %v1029_v2 = vadd.f32 %v1028_v0, %v234_v62  ;;  %v1158_v3 = vadd.f32 %v1157_v1, %v277_v63 }
 0x1c3   :  { %1475 = vst.msk [vmem:[%s3775_s3 + $0x130] sm:$0xff] %vm1436_vm2, %v1029_v2 }
 0x1c4   :  { %v1286_v6 = vpop.f32.mrf.mxu2  ;;  %v1418_v7 = vpop.f32.mrf.mxu3  ;;  %1518 = vst.msk [vmem:[%s3775_s3 + $0x288] sm:$0xff] %vm1436_vm2, %v1158_v3 }
 0x1c5   :  { %v1287_v8 = vadd.f32 %v1286_v6, %v320_v4  ;;  %v1419_v9 = vadd.f32 %v1418_v7, %v364_v5 }
 0x1c7   :  { %1561 = vst.msk [vmem:[%s3775_s3 + $0x3e0] sm:$0xff] %vm1436_vm2, %v1287_v8 }
 0x1c8   :  { %1605 = vst.msk [vmem:[%s3775_s3 + $0x540] sm:$0xff] %vm1436_vm2, %v1419_v9  ;;  %v1031_v12 = vpop.f32.mrf.mxu0  ;;  %v1160_v13 = vpop.f32.mrf.mxu1 }
 0x1c9   :  { %v1032_v14 = vadd.f32 %v1031_v12, %v235_v10  ;;  %v1161_v15 = vadd.f32 %v1160_v13, %v278_v11 }
 0x1cb   :  { %1476 = vst.msk [vmem:[%s3775_s3 + $0x138] sm:$0xff] %vm1436_vm2, %v1032_v14 }
 0x1cc   :  { %v1289_v18 = vpop.f32.mrf.mxu2  ;;  %v1421_v19 = vpop.f32.mrf.mxu3  ;;  %1519 = vst.msk [vmem:[%s3775_s3 + $0x290] sm:$0xff] %vm1436_vm2, %v1161_v15 }
 0x1cd   :  { %v1290_v20 = vadd.f32 %v1289_v18, %v321_v16  ;;  %v1422_v21 = vadd.f32 %v1421_v19, %v365_v17 }
 0x1cf   :  { %1562 = vst.msk [vmem:[%s3775_s3 + $0x3e8] sm:$0xff] %vm1436_vm2, %v1290_v20 }
 0x1d0   :  { %1606 = vst.msk [vmem:[%s3775_s3 + $0x548] sm:$0xff] %vm1436_vm2, %v1422_v21  ;;  %v1034_v24 = vpop.f32.mrf.mxu0  ;;  %v1163_v25 = vpop.f32.mrf.mxu1 }
 0x1d1   :  { %v1035_v26 = vadd.f32 %v1034_v24, %v236_v22  ;;  %v1164_v27 = vadd.f32 %v1163_v25, %v279_v23 }
 0x1d3   :  { %1477 = vst.msk [vmem:[%s3775_s3 + $0x140] sm:$0xff] %vm1436_vm2, %v1035_v26 }
 0x1d4   :  { %v1292_v30 = vpop.f32.mrf.mxu2  ;;  %v1424_v31 = vpop.f32.mrf.mxu3  ;;  %1520 = vst.msk [vmem:[%s3775_s3 + $0x298] sm:$0xff] %vm1436_vm2, %v1164_v27 }
 0x1d5   :  { %v1293_v32 = vadd.f32 %v1292_v30, %v322_v28  ;;  %v1425_v33 = vadd.f32 %v1424_v31, %v366_v29 }
 0x1d7   :  { %1563 = vst.msk [vmem:[%s3775_s3 + $0x3f0] sm:$0xff] %vm1436_vm2, %v1293_v32 }
 0x1d8   :  { %1607 = vst.msk [vmem:[%s3775_s3 + $0x550] sm:$0xff] %vm1436_vm2, %v1425_v33  ;;  %v1037_v36 = vpop.f32.mrf.mxu0  ;;  %v1166_v37 = vpop.f32.mrf.mxu1 }
 0x1d9   :  { %v1038_v38 = vadd.f32 %v1037_v36, %v237_v34  ;;  %v1167_v39 = vadd.f32 %v1166_v37, %v280_v35 }
 0x1db   :  { %1478 = vst.msk [vmem:[%s3775_s3 + $0x148] sm:$0xff] %vm1436_vm2, %v1038_v38 }
 0x1dc   :  { %v1295_v42 = vpop.f32.mrf.mxu2  ;;  %v1427_v43 = vpop.f32.mrf.mxu3  ;;  %1521 = vst.msk [vmem:[%s3775_s3 + $0x2a0] sm:$0xff] %vm1436_vm2, %v1167_v39 }
 0x1dd   :  { %v1296_v44 = vadd.f32 %v1295_v42, %v323_v40  ;;  %v1428_v45 = vadd.f32 %v1427_v43, %v367_v41 }
 0x1df   :  { %1564 = vst.msk [vmem:[%s3775_s3 + $0x3f8] sm:$0xff] %vm1436_vm2, %v1296_v44 }
 0x1e0   :  { %1608 = vst.msk [vmem:[%s3775_s3 + $0x558] sm:$0xff] %vm1436_vm2, %v1428_v45  ;;  %v1040_v48 = vpop.f32.mrf.mxu0  ;;  %v1169_v49 = vpop.f32.mrf.mxu1 }
 0x1e1   :  { %v1041_v50 = vadd.f32 %v1040_v48, %v238_v46  ;;  %v1170_v51 = vadd.f32 %v1169_v49, %v281_v47 }
 0x1e3   :  { %1479 = vst.msk [vmem:[%s3775_s3 + $0x150] sm:$0xff] %vm1436_vm2, %v1041_v50 }
 0x1e4   :  { %v1298_v54 = vpop.f32.mrf.mxu2  ;;  %v1430_v55 = vpop.f32.mrf.mxu3  ;;  %1522 = vst.msk [vmem:[%s3775_s3 + $0x2a8] sm:$0xff] %vm1436_vm2, %v1170_v51 }
 0x1e5   :  { %v1299_v56 = vadd.f32 %v1298_v54, %v324_v52  ;;  %v1431_v57 = vadd.f32 %v1430_v55, %v368_v53 }
 0x1e7   :  { %1565 = vst.msk [vmem:[%s3775_s3 + $0x400] sm:$0xff] %vm1436_vm2, %v1299_v56 }
 0x1e8   :  { %1609 = vst.msk [vmem:[%s3775_s3 + $0x560] sm:$0xff] %vm1436_vm2, %v1431_v57 }
 0x1ec   :  { %v1301_v60 = vpop.f32.mrf.mxu2  ;;  %v1433_v61 = vpop.f32.mrf.mxu3 }
 0x1ed   :  { %v1302_v62 = vadd.f32 %v1301_v60, %v325_v58  ;;  %v1434_v63 = vadd.f32 %v1433_v61, %v369_v59 }
 0x1ef   :  { %1566 = vst.msk [vmem:[%s3775_s3 + $0x408] sm:$0xff] %vm1436_vm2, %v1302_v62 }
 0x1f0   :  { %1610 = vst.msk [vmem:[%s3775_s3 + $0x568] sm:$0xff] %vm1436_vm2, %v1434_v63 }

</bundles_post_ra>
